<compile_context>
chip_gen: v7x
topology: tpu7x:2x2x1
jax: 0.10.0
libtpu: 0.0.40
codegen_flags: <defaults>
</compile_context>

<pallas_src>
import functools

import jax
import jax.numpy as jnp
from jax.experimental import pallas as pl
from jax.experimental.pallas import tpu as pltpu


# ----------------------------------------------------------------------------
# Fused kernel: TB images per grid step, everything VMEM-resident.
# ----------------------------------------------------------------------------
def _lenet5_kernel(x_ref, m1_ref, b1_ref, m2_ref, b2_ref,
                   wf1_ref, bf1_ref, wf2_ref, bf2_ref, wf3_ref, bf3_ref,
                   out_ref, rp1_ref, z_ref, *, tb):
    f32 = jnp.float32

    # ---- conv1 (column-pool + 1/4 scale folded into the band matrices) -----
    # x_ref rows are (padded_row r in [0,32), image b in [0,tb)) interleaved,
    # image fastest, so band i is one contiguous tb-aligned window of the ref.
    acc1 = jnp.dot(x_ref[0:28 * tb, :], m1_ref[0], preferred_element_type=f32)
    for i in range(1, 5):
        acc1 = acc1 + jnp.dot(x_ref[i * tb:(i + 28) * tb, :], m1_ref[i],
                              preferred_element_type=f32)
    # acc1: (28*tb, 84), rows (y, b), lanes (pooled_x*6 + c_out), no bias yet.

    # ---- pool1 rows: even/odd tb-block add (+ conv1 bias) -> rp1 scratch ---
    b1b = jnp.broadcast_to(b1_ref[...], (tb, 84))           # hoisted broadcast
    for p in range(14):
        rp1_ref[p * tb:(p + 1) * tb, :] = (
            acc1[(2 * p) * tb:(2 * p + 1) * tb, :]
            + acc1[(2 * p + 1) * tb:(2 * p + 2) * tb, :] + b1b)

    # ---- conv2 (column-pool folded), bands sliced from the rp1 scratch ref --
    acc2 = jnp.dot(rp1_ref[0:10 * tb, :], m2_ref[0], preferred_element_type=f32)
    for i in range(1, 5):
        acc2 = acc2 + jnp.dot(rp1_ref[i * tb:(i + 10) * tb, :], m2_ref[i],
                              preferred_element_type=f32)
    # acc2: (10*tb, 80), rows (y, b), lanes (pooled_x*16 + c_out).

    # ---- pool2 rows (+ conv2 bias) -> z scratch: rows (pooled_y, b) ---------
    b2b = jnp.broadcast_to(b2_ref[...], (tb, 80))
    for p in range(5):
        z_ref[p * tb:(p + 1) * tb, :] = (
            acc2[(2 * p) * tb:(2 * p + 1) * tb, :]
            + acc2[(2 * p + 1) * tb:(2 * p + 2) * tb, :] + b2b)

    # ---- fc1: batched over the tb images (M = tb); the PyTorch NCHW flatten
    # is folded into the per-row weight split; all FC lanes padded to 128. ----
    h = jnp.dot(z_ref[0:tb, :], wf1_ref[0], preferred_element_type=f32)
    for r in range(1, 5):
        h = h + jnp.dot(z_ref[r * tb:(r + 1) * tb, :], wf1_ref[r],
                        preferred_element_type=f32)
    h = jnp.maximum(h + bf1_ref[...], 0.0)                   # (tb, 128)

    # ---- fc2 ----------------------------------------------------------------
    h = jnp.maximum(jnp.dot(h, wf2_ref[...], preferred_element_type=f32)
                    + bf2_ref[...], 0.0)                     # (tb, 128)

    # ---- fc3: lane-dense (tb, 128) store; wrapper slices [:, :10] -----------
    out_ref[...] = (jnp.dot(h, wf3_ref[...], preferred_element_type=f32)
                    + bf3_ref[...])


# ----------------------------------------------------------------------------
# One-time parameter preprocessing (hoisted out of the forward pass).
# ----------------------------------------------------------------------------
def prepare_params(p):
    """Convert PyTorch-layout params into kernel-ready band/FC matrices."""
    f32 = jnp.float32
    w1 = p["w1"].astype(f32)       # (6, 1, 5, 5)
    b1 = p["b1"].astype(f32)       # (6,)
    w2 = p["w2"].astype(f32)       # (16, 6, 5, 5)
    b2 = p["b2"].astype(f32)       # (16,)
    wf1, bf1 = p["wf1"].astype(f32), p["bf1"].astype(f32)   # (400,120),(120,)
    wf2, bf2 = p["wf2"].astype(f32), p["bf2"].astype(f32)   # (120,84),(84,)
    wf3, bf3 = p["wf3"].astype(f32), p["bf3"].astype(f32)   # (84,10),(10,)

    # conv1 band matrices: m1[i, x_in, x_out*6+co] = w1[co,0,i, x_in-x_out+2]
    x_in = jnp.arange(28)[:, None]
    x_out = jnp.arange(28)[None, :]
    j = x_in - x_out + 2
    valid1 = (j >= 0) & (j <= 4)
    jc = jnp.clip(j, 0, 4)
    g1 = w1[:, 0, :, :][:, :, jc]                     # (co, i, x_in, x_out)
    m1 = jnp.transpose(g1, (1, 2, 3, 0))              # (i, x_in, x_out, co)
    m1 = jnp.where(valid1[None, :, :, None], m1, 0.0).reshape(5, 28, 168)
    # Fold the 2x2 pool's column average and the full 1/4 scale into the bands.
    m1pc = 0.25 * m1.reshape(5, 28, 14, 2, 6).sum(axis=3).reshape(5, 28, 84)
    b1t = jnp.tile(b1, 14).reshape(1, 84)             # pooled bias per (x, co)

    # conv2 band matrices: m2[i, x_in*6+ci, x_out*16+co] = w2[co,ci,i, x_in-x_out]
    x_in2 = jnp.arange(14)[:, None]
    x_out2 = jnp.arange(10)[None, :]
    j2 = x_in2 - x_out2
    valid2 = (j2 >= 0) & (j2 <= 4)
    jc2 = jnp.clip(j2, 0, 4)
    g2 = w2[:, :, :, jc2]                             # (co, ci, i, x_in, x_out)
    m2 = jnp.transpose(g2, (2, 3, 1, 4, 0))           # (i, x_in, ci, x_out, co)
    m2 = jnp.where(valid2[None, :, None, :, None], m2, 0.0).reshape(5, 84, 160)
    m2pc = 0.25 * m2.reshape(5, 84, 5, 2, 16).sum(axis=3).reshape(5, 84, 80)
    b2t = jnp.tile(b2, 5).reshape(1, 80)

    # fc1: reorder rows so the PyTorch NCHW flatten (feature = co*25+py*5+px)
    # matches the kernel's z layout (row py, lane px*16+co); split along py;
    # pad output lanes 120 -> 128 for a lane-dense FC chain.
    py = jnp.arange(5)[:, None, None]
    px = jnp.arange(5)[None, :, None]
    co = jnp.arange(16)[None, None, :]
    idx = co * 25 + py * 5 + px                       # (5, 5, 16)
    wf1p = jnp.zeros((5, 80, 128), f32).at[:, :, :120].set(
        wf1[idx].reshape(5, 80, 120))
    bf1p = jnp.zeros((1, 128), f32).at[0, :120].set(bf1)

    # fc2 / fc3 padded to 128x128 (zero rows/cols keep results exact).
    wf2p = jnp.zeros((128, 128), f32).at[:120, :84].set(wf2)
    bf2p = jnp.zeros((1, 128), f32).at[0, :84].set(bf2)
    wf3p = jnp.zeros((128, 128), f32).at[:84, :10].set(wf3)
    bf3p = jnp.zeros((1, 128), f32).at[0, :10].set(bf3)

    return dict(m1pc=m1pc, b1t=b1t, m2pc=m2pc, b2t=b2t,
                wf1p=wf1p, bf1p=bf1p, wf2p=wf2p, bf2p=bf2p,
                wf3p=wf3p, bf3p=bf3p)


# ----------------------------------------------------------------------------
# Forward pass: one fused pallas_call, TB images per grid step.
# ----------------------------------------------------------------------------
def lenet5_forward(x_nchw, prep, block_images=8):
    tb = block_images
    assert tb % 8 == 0, "block_images must be a multiple of 8 (sublane tile)"
    n = x_nchw.shape[0]
    g = -(-n // tb)                                   # ceil(n / tb)
    pad_n = g * tb - n

    x = x_nchw.astype(jnp.float32)
    if pad_n:
        x = jnp.pad(x, ((0, pad_n), (0, 0), (0, 0), (0, 0)))
    # Host-side layout plumbing (tiny input, one fused XLA op): zero-pad the
    # conv1 rows (+/-2) and interleave rows/images so every conv band is one
    # contiguous, 8-aligned window of the kernel's input ref.  Row order per
    # grid step: (padded_row r in [0,32), image b in [0,tb)).
    xh = x.reshape(g, tb, 28, 28)
    xh = jnp.pad(xh, ((0, 0), (0, 0), (2, 2), (0, 0)))       # (g, tb, 32, 28)
    xh = jnp.transpose(xh, (0, 2, 1, 3)).reshape(g * 32 * tb, 28)

    weights = [prep[k] for k in ("m1pc", "b1t", "m2pc", "b2t", "wf1p", "bf1p",
                                 "wf2p", "bf2p", "wf3p", "bf3p")]

    def resident(a):                                  # VMEM-resident full block
        zero = (0,) * a.ndim
        return pl.BlockSpec(a.shape, lambda i, _z=zero: _z)

    in_specs = [pl.BlockSpec((32 * tb, 28), lambda i: (i, 0))]
    in_specs += [resident(w) for w in weights]

    w_bytes = sum(int(w.size) * 4 for w in weights)
    cost = pl.CostEstimate(flops=int(1.6e6) * g * tb, transcendentals=0,
                           bytes_accessed=int(xh.size) * 4 + w_bytes
                           + g * tb * 128 * 4)

    out = pl.pallas_call(
        functools.partial(_lenet5_kernel, tb=tb),
        out_shape=jax.ShapeDtypeStruct((g * tb, 128), jnp.float32),
        grid_spec=pltpu.PrefetchScalarGridSpec(
            num_scalar_prefetch=0,
            grid=(g,),
            in_specs=in_specs,
            out_specs=pl.BlockSpec((tb, 128), lambda i: (i, 0)),
            scratch_shapes=[pltpu.VMEM((14 * tb, 84), jnp.float32),   # pooled conv1
                            pltpu.VMEM((5 * tb, 80), jnp.float32)],   # pooled conv2
        ),
        compiler_params=pltpu.CompilerParams(
            dimension_semantics=("parallel",)),
        cost_estimate=cost,
    )(xh, *weights)
    return out[:n, :10]


# ----------------------------------------------------------------------------
# Pure-JAX reference (for a correctness check) and synthetic params.
# ----------------------------------------------------------------------------
def lenet5_reference(x_nchw, params):
    hi = jax.lax.Precision.HIGHEST
    dn = ("NCHW", "OIHW", "NCHW")
    x = x_nchw.astype(jnp.float32)
    y = jax.lax.conv_general_dilated(x, params["w1"], (1, 1), ((2, 2), (2, 2)),
                                     dimension_numbers=dn, precision=hi)
    y = y + params["b1"][None, :, None, None]
    y = jax.lax.reduce_window(y, 0.0, jax.lax.add,
                              (1, 1, 2, 2), (1, 1, 2, 2), "VALID") * 0.25
    y = jax.lax.conv_general_dilated(y, params["w2"], (1, 1), ((0, 0), (0, 0)),
                                     dimension_numbers=dn, precision=hi)
    y = y + params["b2"][None, :, None, None]
    y = jax.lax.reduce_window(y, 0.0, jax.lax.add,
                              (1, 1, 2, 2), (1, 1, 2, 2), "VALID") * 0.25
    y = y.reshape(y.shape[0], -1)                     # NCHW flatten -> (N, 400)
    y = jnp.maximum(jnp.dot(y, params["wf1"], precision=hi) + params["bf1"], 0.0)
    y = jnp.maximum(jnp.dot(y, params["wf2"], precision=hi) + params["bf2"], 0.0)
    return jnp.dot(y, params["wf3"], precision=hi) + params["bf3"]


def init_params(key):
    """Deterministic synthetic params matching the PyTorch module's shapes."""
    ks = jax.random.split(key, 10)

    def u(k, shape, fan_in):
        bound = 1.0 / jnp.sqrt(jnp.float32(fan_in))
        return jax.random.uniform(k, shape, jnp.float32, -bound, bound)

    return {
        "w1": u(ks[0], (6, 1, 5, 5), 1 * 5 * 5),
        "b1": u(ks[1], (6,), 1 * 5 * 5),
        "w2": u(ks[2], (16, 6, 5, 5), 6 * 5 * 5),
        "b2": u(ks[3], (16,), 6 * 5 * 5),
        # fc weights stored as (in, out) == PyTorch weight.T
        "wf1": u(ks[4], (400, 120), 400),
        "bf1": u(ks[5], (120,), 400),
        "wf2": u(ks[6], (120, 84), 120),
        "bf2": u(ks[7], (84,), 120),
        "wf3": u(ks[8], (84, 10), 84),
        "bf3": u(ks[9], (10,), 84),
    }


if __name__ == "__main__":
    key = jax.random.PRNGKey(0)
    k_params, k_x = jax.random.split(key)
    params = init_params(k_params)
    prep = prepare_params(params)                     # one-time weight prep

    # LeNet5 geometry requires 1x28x28 inputs (MNIST-like); batch = 2.
    x = jax.random.normal(k_x, (2, 1, 28, 28), jnp.float32)

    logits = jax.block_until_ready(jax.jit(lenet5_forward)(x, prep))
    assert logits.shape == (2, 10), logits.shape
    assert logits.dtype == jnp.float32

    ref = jax.block_until_ready(lenet5_reference(x, params))
    err = float(jnp.max(jnp.abs(logits - ref)))
    assert err < 1e-2, f"max abs error vs reference: {err}"

    print("KERNEL_OK")
</pallas_src>

<mosaic_0001>
module attributes {stable_mosaic.version = 11 : i64} {
  func.func @_lenet5_kernel(%arg0: i32, %arg1: memref<256x28xf32, #tpu.memory_space<vmem>>, %arg2: memref<5x28x84xf32, #tpu.memory_space<vmem>>, %arg3: memref<1x84xf32, #tpu.memory_space<vmem>>, %arg4: memref<5x84x80xf32, #tpu.memory_space<vmem>>, %arg5: memref<1x80xf32, #tpu.memory_space<vmem>>, %arg6: memref<5x80x128xf32, #tpu.memory_space<vmem>>, %arg7: memref<1x128xf32, #tpu.memory_space<vmem>>, %arg8: memref<128x128xf32, #tpu.memory_space<vmem>>, %arg9: memref<1x128xf32, #tpu.memory_space<vmem>>, %arg10: memref<128x128xf32, #tpu.memory_space<vmem>>, %arg11: memref<1x128xf32, #tpu.memory_space<vmem>>, %arg12: memref<8x128xf32, #tpu.memory_space<vmem>>, %arg13: memref<112x84xf32, #tpu.memory_space<vmem>>, %arg14: memref<40x80xf32, #tpu.memory_space<vmem>>) attributes {dimension_semantics = [#tpu.dimension_semantics<parallel>], iteration_bounds = array<i64: 1>, scalar_prefetch = 0 : i64, scratch_operands = 2 : i64, tpu.core_type = #tpu.core_type<tc>, window_params = [{transform_indices = @transform_0, window_bounds = array<i64: 256, 28>}, {pipeline_mode = #tpu.pipeline_mode<synchronous>, transform_indices = @transform_1, window_bounds = array<i64: 5, 28, 84>}, {pipeline_mode = #tpu.pipeline_mode<synchronous>, transform_indices = @transform_2, window_bounds = array<i64: 1, 84>}, {pipeline_mode = #tpu.pipeline_mode<synchronous>, transform_indices = @transform_3, window_bounds = array<i64: 5, 84, 80>}, {pipeline_mode = #tpu.pipeline_mode<synchronous>, transform_indices = @transform_4, window_bounds = array<i64: 1, 80>}, {pipeline_mode = #tpu.pipeline_mode<synchronous>, transform_indices = @transform_5, window_bounds = array<i64: 5, 80, 128>}, {pipeline_mode = #tpu.pipeline_mode<synchronous>, transform_indices = @transform_6, window_bounds = array<i64: 1, 128>}, {pipeline_mode = #tpu.pipeline_mode<synchronous>, transform_indices = @transform_7, window_bounds = array<i64: 128, 128>}, {pipeline_mode = #tpu.pipeline_mode<synchronous>, transform_indices = @transform_8, window_bounds = array<i64: 1, 128>}, {pipeline_mode = #tpu.pipeline_mode<synchronous>, transform_indices = @transform_9, window_bounds = array<i64: 128, 128>}, {pipeline_mode = #tpu.pipeline_mode<synchronous>, transform_indices = @transform_10, window_bounds = array<i64: 1, 128>}, {transform_indices = @transform_11, window_bounds = array<i64: 8, 128>}]} {
    %c0 = arith.constant 0 : index
    %c0_0 = arith.constant 0 : index
    %0 = vector.load %arg1[%c0, %c0_0] : memref<256x28xf32, #tpu.memory_space<vmem>>, vector<224x28xf32>
    %c0_1 = arith.constant 0 : index
    %c0_2 = arith.constant 0 : index
    %c0_3 = arith.constant 0 : index
    %1 = vector.load %arg2[%c0_1, %c0_2, %c0_3] : memref<5x28x84xf32, #tpu.memory_space<vmem>>, vector<1x28x84xf32>
    %2 = vector.shape_cast %1 : vector<1x28x84xf32> to vector<28x84xf32>
    %cst = arith.constant dense<0.000000e+00> : vector<224x84xf32>
    %3 = tpu.matmul %0, %2, %cst {dimension_numbers = #tpu.dot_dimension_numbers<[1], [0], [0], [1], [0, 0, 1, 1], [], []>} : vector<224x28xf32>, vector<28x84xf32>, vector<224x84xf32> -> vector<224x84xf32>
    %c8 = arith.constant 8 : index
    %c0_4 = arith.constant 0 : index
    %4 = vector.load %arg1[%c8, %c0_4] : memref<256x28xf32, #tpu.memory_space<vmem>>, vector<224x28xf32>
    %c1 = arith.constant 1 : index
    %c0_5 = arith.constant 0 : index
    %c0_6 = arith.constant 0 : index
    %5 = vector.load %arg2[%c1, %c0_5, %c0_6] : memref<5x28x84xf32, #tpu.memory_space<vmem>>, vector<1x28x84xf32>
    %6 = vector.shape_cast %5 : vector<1x28x84xf32> to vector<28x84xf32>
    %cst_7 = arith.constant dense<0.000000e+00> : vector<224x84xf32>
    %7 = tpu.matmul %4, %6, %cst_7 {dimension_numbers = #tpu.dot_dimension_numbers<[1], [0], [0], [1], [0, 0, 1, 1], [], []>} : vector<224x28xf32>, vector<28x84xf32>, vector<224x84xf32> -> vector<224x84xf32>
    %8 = arith.addf %3, %7 : vector<224x84xf32>
    %c16 = arith.constant 16 : index
    %c0_8 = arith.constant 0 : index
    %9 = vector.load %arg1[%c16, %c0_8] : memref<256x28xf32, #tpu.memory_space<vmem>>, vector<224x28xf32>
    %c2 = arith.constant 2 : index
    %c0_9 = arith.constant 0 : index
    %c0_10 = arith.constant 0 : index
    %10 = vector.load %arg2[%c2, %c0_9, %c0_10] : memref<5x28x84xf32, #tpu.memory_space<vmem>>, vector<1x28x84xf32>
    %11 = vector.shape_cast %10 : vector<1x28x84xf32> to vector<28x84xf32>
    %cst_11 = arith.constant dense<0.000000e+00> : vector<224x84xf32>
    %12 = tpu.matmul %9, %11, %cst_11 {dimension_numbers = #tpu.dot_dimension_numbers<[1], [0], [0], [1], [0, 0, 1, 1], [], []>} : vector<224x28xf32>, vector<28x84xf32>, vector<224x84xf32> -> vector<224x84xf32>
    %13 = arith.addf %8, %12 : vector<224x84xf32>
    %c24 = arith.constant 24 : index
    %c0_12 = arith.constant 0 : index
    %14 = vector.load %arg1[%c24, %c0_12] : memref<256x28xf32, #tpu.memory_space<vmem>>, vector<224x28xf32>
    %c3 = arith.constant 3 : index
    %c0_13 = arith.constant 0 : index
    %c0_14 = arith.constant 0 : index
    %15 = vector.load %arg2[%c3, %c0_13, %c0_14] : memref<5x28x84xf32, #tpu.memory_space<vmem>>, vector<1x28x84xf32>
    %16 = vector.shape_cast %15 : vector<1x28x84xf32> to vector<28x84xf32>
    %cst_15 = arith.constant dense<0.000000e+00> : vector<224x84xf32>
    %17 = tpu.matmul %14, %16, %cst_15 {dimension_numbers = #tpu.dot_dimension_numbers<[1], [0], [0], [1], [0, 0, 1, 1], [], []>} : vector<224x28xf32>, vector<28x84xf32>, vector<224x84xf32> -> vector<224x84xf32>
    %18 = arith.addf %13, %17 : vector<224x84xf32>
    %c32 = arith.constant 32 : index
    %c0_16 = arith.constant 0 : index
    %19 = vector.load %arg1[%c32, %c0_16] : memref<256x28xf32, #tpu.memory_space<vmem>>, vector<224x28xf32>
    %c4 = arith.constant 4 : index
    %c0_17 = arith.constant 0 : index
    %c0_18 = arith.constant 0 : index
    %20 = vector.load %arg2[%c4, %c0_17, %c0_18] : memref<5x28x84xf32, #tpu.memory_space<vmem>>, vector<1x28x84xf32>
    %21 = vector.shape_cast %20 : vector<1x28x84xf32> to vector<28x84xf32>
    %cst_19 = arith.constant dense<0.000000e+00> : vector<224x84xf32>
    %22 = tpu.matmul %19, %21, %cst_19 {dimension_numbers = #tpu.dot_dimension_numbers<[1], [0], [0], [1], [0, 0, 1, 1], [], []>} : vector<224x28xf32>, vector<28x84xf32>, vector<224x84xf32> -> vector<224x84xf32>
    %23 = arith.addf %18, %22 : vector<224x84xf32>
    %c0_20 = arith.constant 0 : index
    %c0_21 = arith.constant 0 : index
    %24 = vector.load %arg3[%c0_20, %c0_21] : memref<1x84xf32, #tpu.memory_space<vmem>>, vector<1x84xf32>
    %25 = vector.shape_cast %24 : vector<1x84xf32> to vector<1x84xf32>
    %26 = vector.broadcast %25 : vector<1x84xf32> to vector<8x84xf32>
    %27 = vector.extract_strided_slice %23 {offsets = [0, 0], sizes = [8, 84], strides = [1, 1]} : vector<224x84xf32> to vector<8x84xf32>
    %28 = vector.extract_strided_slice %23 {offsets = [8, 0], sizes = [8, 84], strides = [1, 1]} : vector<224x84xf32> to vector<8x84xf32>
    %29 = arith.addf %27, %28 : vector<8x84xf32>
    %30 = arith.addf %29, %26 : vector<8x84xf32>
    %c0_22 = arith.constant 0 : index
    %c0_23 = arith.constant 0 : index
    %31 = vector.load %arg13[%c0_22, %c0_23] : memref<112x84xf32, #tpu.memory_space<vmem>>, vector<8x84xf32>
    tpu.vector_store %arg13[%c0_22, %c0_23], %30 {strides = array<i32>} : memref<112x84xf32, #tpu.memory_space<vmem>>, vector<8x84xf32>,
    %32 = vector.extract_strided_slice %23 {offsets = [16, 0], sizes = [8, 84], strides = [1, 1]} : vector<224x84xf32> to vector<8x84xf32>
    %33 = vector.extract_strided_slice %23 {offsets = [24, 0], sizes = [8, 84], strides = [1, 1]} : vector<224x84xf32> to vector<8x84xf32>
    %34 = arith.addf %32, %33 : vector<8x84xf32>
    %35 = arith.addf %34, %26 : vector<8x84xf32>
    %c8_24 = arith.constant 8 : index
    %c0_25 = arith.constant 0 : index
    %36 = vector.load %arg13[%c8_24, %c0_25] : memref<112x84xf32, #tpu.memory_space<vmem>>, vector<8x84xf32>
    tpu.vector_store %arg13[%c8_24, %c0_25], %35 {strides = array<i32>} : memref<112x84xf32, #tpu.memory_space<vmem>>, vector<8x84xf32>,
    %37 = vector.extract_strided_slice %23 {offsets = [32, 0], sizes = [8, 84], strides = [1, 1]} : vector<224x84xf32> to vector<8x84xf32>
    %38 = vector.extract_strided_slice %23 {offsets = [40, 0], sizes = [8, 84], strides = [1, 1]} : vector<224x84xf32> to vector<8x84xf32>
    %39 = arith.addf %37, %38 : vector<8x84xf32>
    %40 = arith.addf %39, %26 : vector<8x84xf32>
    %c16_26 = arith.constant 16 : index
    %c0_27 = arith.constant 0 : index
    %41 = vector.load %arg13[%c16_26, %c0_27] : memref<112x84xf32, #tpu.memory_space<vmem>>, vector<8x84xf32>
    tpu.vector_store %arg13[%c16_26, %c0_27], %40 {strides = array<i32>} : memref<112x84xf32, #tpu.memory_space<vmem>>, vector<8x84xf32>,
    %42 = vector.extract_strided_slice %23 {offsets = [48, 0], sizes = [8, 84], strides = [1, 1]} : vector<224x84xf32> to vector<8x84xf32>
    %43 = vector.extract_strided_slice %23 {offsets = [56, 0], sizes = [8, 84], strides = [1, 1]} : vector<224x84xf32> to vector<8x84xf32>
    %44 = arith.addf %42, %43 : vector<8x84xf32>
    %45 = arith.addf %44, %26 : vector<8x84xf32>
    %c24_28 = arith.constant 24 : index
    %c0_29 = arith.constant 0 : index
    %46 = vector.load %arg13[%c24_28, %c0_29] : memref<112x84xf32, #tpu.memory_space<vmem>>, vector<8x84xf32>
    tpu.vector_store %arg13[%c24_28, %c0_29], %45 {strides = array<i32>} : memref<112x84xf32, #tpu.memory_space<vmem>>, vector<8x84xf32>,
    %47 = vector.extract_strided_slice %23 {offsets = [64, 0], sizes = [8, 84], strides = [1, 1]} : vector<224x84xf32> to vector<8x84xf32>
    %48 = vector.extract_strided_slice %23 {offsets = [72, 0], sizes = [8, 84], strides = [1, 1]} : vector<224x84xf32> to vector<8x84xf32>
    %49 = arith.addf %47, %48 : vector<8x84xf32>
    %50 = arith.addf %49, %26 : vector<8x84xf32>
    %c32_30 = arith.constant 32 : index
    %c0_31 = arith.constant 0 : index
    %51 = vector.load %arg13[%c32_30, %c0_31] : memref<112x84xf32, #tpu.memory_space<vmem>>, vector<8x84xf32>
    tpu.vector_store %arg13[%c32_30, %c0_31], %50 {strides = array<i32>} : memref<112x84xf32, #tpu.memory_space<vmem>>, vector<8x84xf32>,
    %52 = vector.extract_strided_slice %23 {offsets = [80, 0], sizes = [8, 84], strides = [1, 1]} : vector<224x84xf32> to vector<8x84xf32>
    %53 = vector.extract_strided_slice %23 {offsets = [88, 0], sizes = [8, 84], strides = [1, 1]} : vector<224x84xf32> to vector<8x84xf32>
    %54 = arith.addf %52, %53 : vector<8x84xf32>
    %55 = arith.addf %54, %26 : vector<8x84xf32>
    %c40 = arith.constant 40 : index
    %c0_32 = arith.constant 0 : index
    %56 = vector.load %arg13[%c40, %c0_32] : memref<112x84xf32, #tpu.memory_space<vmem>>, vector<8x84xf32>
    tpu.vector_store %arg13[%c40, %c0_32], %55 {strides = array<i32>} : memref<112x84xf32, #tpu.memory_space<vmem>>, vector<8x84xf32>,
    %57 = vector.extract_strided_slice %23 {offsets = [96, 0], sizes = [8, 84], strides = [1, 1]} : vector<224x84xf32> to vector<8x84xf32>
    %58 = vector.extract_strided_slice %23 {offsets = [104, 0], sizes = [8, 84], strides = [1, 1]} : vector<224x84xf32> to vector<8x84xf32>
    %59 = arith.addf %57, %58 : vector<8x84xf32>
    %60 = arith.addf %59, %26 : vector<8x84xf32>
    %c48 = arith.constant 48 : index
    %c0_33 = arith.constant 0 : index
    %61 = vector.load %arg13[%c48, %c0_33] : memref<112x84xf32, #tpu.memory_space<vmem>>, vector<8x84xf32>
    tpu.vector_store %arg13[%c48, %c0_33], %60 {strides = array<i32>} : memref<112x84xf32, #tpu.memory_space<vmem>>, vector<8x84xf32>,
    %62 = vector.extract_strided_slice %23 {offsets = [112, 0], sizes = [8, 84], strides = [1, 1]} : vector<224x84xf32> to vector<8x84xf32>
    %63 = vector.extract_strided_slice %23 {offsets = [120, 0], sizes = [8, 84], strides = [1, 1]} : vector<224x84xf32> to vector<8x84xf32>
    %64 = arith.addf %62, %63 : vector<8x84xf32>
    %65 = arith.addf %64, %26 : vector<8x84xf32>
    %c56 = arith.constant 56 : index
    %c0_34 = arith.constant 0 : index
    %66 = vector.load %arg13[%c56, %c0_34] : memref<112x84xf32, #tpu.memory_space<vmem>>, vector<8x84xf32>
    tpu.vector_store %arg13[%c56, %c0_34], %65 {strides = array<i32>} : memref<112x84xf32, #tpu.memory_space<vmem>>, vector<8x84xf32>,
    %67 = vector.extract_strided_slice %23 {offsets = [128, 0], sizes = [8, 84], strides = [1, 1]} : vector<224x84xf32> to vector<8x84xf32>
    %68 = vector.extract_strided_slice %23 {offsets = [136, 0], sizes = [8, 84], strides = [1, 1]} : vector<224x84xf32> to vector<8x84xf32>
    %69 = arith.addf %67, %68 : vector<8x84xf32>
    %70 = arith.addf %69, %26 : vector<8x84xf32>
    %c64 = arith.constant 64 : index
    %c0_35 = arith.constant 0 : index
    %71 = vector.load %arg13[%c64, %c0_35] : memref<112x84xf32, #tpu.memory_space<vmem>>, vector<8x84xf32>
    tpu.vector_store %arg13[%c64, %c0_35], %70 {strides = array<i32>} : memref<112x84xf32, #tpu.memory_space<vmem>>, vector<8x84xf32>,
    %72 = vector.extract_strided_slice %23 {offsets = [144, 0], sizes = [8, 84], strides = [1, 1]} : vector<224x84xf32> to vector<8x84xf32>
    %73 = vector.extract_strided_slice %23 {offsets = [152, 0], sizes = [8, 84], strides = [1, 1]} : vector<224x84xf32> to vector<8x84xf32>
    %74 = arith.addf %72, %73 : vector<8x84xf32>
    %75 = arith.addf %74, %26 : vector<8x84xf32>
    %c72 = arith.constant 72 : index
    %c0_36 = arith.constant 0 : index
    %76 = vector.load %arg13[%c72, %c0_36] : memref<112x84xf32, #tpu.memory_space<vmem>>, vector<8x84xf32>
    tpu.vector_store %arg13[%c72, %c0_36], %75 {strides = array<i32>} : memref<112x84xf32, #tpu.memory_space<vmem>>, vector<8x84xf32>,
    %77 = vector.extract_strided_slice %23 {offsets = [160, 0], sizes = [8, 84], strides = [1, 1]} : vector<224x84xf32> to vector<8x84xf32>
    %78 = vector.extract_strided_slice %23 {offsets = [168, 0], sizes = [8, 84], strides = [1, 1]} : vector<224x84xf32> to vector<8x84xf32>
    %79 = arith.addf %77, %78 : vector<8x84xf32>
    %80 = arith.addf %79, %26 : vector<8x84xf32>
    %c80 = arith.constant 80 : index
    %c0_37 = arith.constant 0 : index
    %81 = vector.load %arg13[%c80, %c0_37] : memref<112x84xf32, #tpu.memory_space<vmem>>, vector<8x84xf32>
    tpu.vector_store %arg13[%c80, %c0_37], %80 {strides = array<i32>} : memref<112x84xf32, #tpu.memory_space<vmem>>, vector<8x84xf32>,
    %82 = vector.extract_strided_slice %23 {offsets = [176, 0], sizes = [8, 84], strides = [1, 1]} : vector<224x84xf32> to vector<8x84xf32>
    %83 = vector.extract_strided_slice %23 {offsets = [184, 0], sizes = [8, 84], strides = [1, 1]} : vector<224x84xf32> to vector<8x84xf32>
    %84 = arith.addf %82, %83 : vector<8x84xf32>
    %85 = arith.addf %84, %26 : vector<8x84xf32>
    %c88 = arith.constant 88 : index
    %c0_38 = arith.constant 0 : index
    %86 = vector.load %arg13[%c88, %c0_38] : memref<112x84xf32, #tpu.memory_space<vmem>>, vector<8x84xf32>
    tpu.vector_store %arg13[%c88, %c0_38], %85 {strides = array<i32>} : memref<112x84xf32, #tpu.memory_space<vmem>>, vector<8x84xf32>,
    %87 = vector.extract_strided_slice %23 {offsets = [192, 0], sizes = [8, 84], strides = [1, 1]} : vector<224x84xf32> to vector<8x84xf32>
    %88 = vector.extract_strided_slice %23 {offsets = [200, 0], sizes = [8, 84], strides = [1, 1]} : vector<224x84xf32> to vector<8x84xf32>
    %89 = arith.addf %87, %88 : vector<8x84xf32>
    %90 = arith.addf %89, %26 : vector<8x84xf32>
    %c96 = arith.constant 96 : index
    %c0_39 = arith.constant 0 : index
    %91 = vector.load %arg13[%c96, %c0_39] : memref<112x84xf32, #tpu.memory_space<vmem>>, vector<8x84xf32>
    tpu.vector_store %arg13[%c96, %c0_39], %90 {strides = array<i32>} : memref<112x84xf32, #tpu.memory_space<vmem>>, vector<8x84xf32>,
    %92 = vector.extract_strided_slice %23 {offsets = [208, 0], sizes = [8, 84], strides = [1, 1]} : vector<224x84xf32> to vector<8x84xf32>
    %93 = vector.extract_strided_slice %23 {offsets = [216, 0], sizes = [8, 84], strides = [1, 1]} : vector<224x84xf32> to vector<8x84xf32>
    %94 = arith.addf %92, %93 : vector<8x84xf32>
    %95 = arith.addf %94, %26 : vector<8x84xf32>
    %c104 = arith.constant 104 : index
    %c0_40 = arith.constant 0 : index
    %96 = vector.load %arg13[%c104, %c0_40] : memref<112x84xf32, #tpu.memory_space<vmem>>, vector<8x84xf32>
    tpu.vector_store %arg13[%c104, %c0_40], %95 {strides = array<i32>} : memref<112x84xf32, #tpu.memory_space<vmem>>, vector<8x84xf32>,
    %c0_41 = arith.constant 0 : index
    %c0_42 = arith.constant 0 : index
    %97 = vector.load %arg13[%c0_41, %c0_42] : memref<112x84xf32, #tpu.memory_space<vmem>>, vector<80x84xf32>
    %c0_43 = arith.constant 0 : index
    %c0_44 = arith.constant 0 : index
    %c0_45 = arith.constant 0 : index
    %98 = vector.load %arg4[%c0_43, %c0_44, %c0_45] : memref<5x84x80xf32, #tpu.memory_space<vmem>>, vector<1x84x80xf32>
    %99 = vector.shape_cast %98 : vector<1x84x80xf32> to vector<84x80xf32>
    %cst_46 = arith.constant dense<0.000000e+00> : vector<80x80xf32>
    %100 = tpu.matmul %97, %99, %cst_46 {dimension_numbers = #tpu.dot_dimension_numbers<[1], [0], [0], [1], [0, 0, 1, 1], [], []>} : vector<80x84xf32>, vector<84x80xf32>, vector<80x80xf32> -> vector<80x80xf32>
    %c8_47 = arith.constant 8 : index
    %c0_48 = arith.constant 0 : index
    %101 = vector.load %arg13[%c8_47, %c0_48] : memref<112x84xf32, #tpu.memory_space<vmem>>, vector<80x84xf32>
    %c1_49 = arith.constant 1 : index
    %c0_50 = arith.constant 0 : index
    %c0_51 = arith.constant 0 : index
    %102 = vector.load %arg4[%c1_49, %c0_50, %c0_51] : memref<5x84x80xf32, #tpu.memory_space<vmem>>, vector<1x84x80xf32>
    %103 = vector.shape_cast %102 : vector<1x84x80xf32> to vector<84x80xf32>
    %cst_52 = arith.constant dense<0.000000e+00> : vector<80x80xf32>
    %104 = tpu.matmul %101, %103, %cst_52 {dimension_numbers = #tpu.dot_dimension_numbers<[1], [0], [0], [1], [0, 0, 1, 1], [], []>} : vector<80x84xf32>, vector<84x80xf32>, vector<80x80xf32> -> vector<80x80xf32>
    %105 = arith.addf %100, %104 : vector<80x80xf32>
    %c16_53 = arith.constant 16 : index
    %c0_54 = arith.constant 0 : index
    %106 = vector.load %arg13[%c16_53, %c0_54] : memref<112x84xf32, #tpu.memory_space<vmem>>, vector<80x84xf32>
    %c2_55 = arith.constant 2 : index
    %c0_56 = arith.constant 0 : index
    %c0_57 = arith.constant 0 : index
    %107 = vector.load %arg4[%c2_55, %c0_56, %c0_57] : memref<5x84x80xf32, #tpu.memory_space<vmem>>, vector<1x84x80xf32>
    %108 = vector.shape_cast %107 : vector<1x84x80xf32> to vector<84x80xf32>
    %cst_58 = arith.constant dense<0.000000e+00> : vector<80x80xf32>
    %109 = tpu.matmul %106, %108, %cst_58 {dimension_numbers = #tpu.dot_dimension_numbers<[1], [0], [0], [1], [0, 0, 1, 1], [], []>} : vector<80x84xf32>, vector<84x80xf32>, vector<80x80xf32> -> vector<80x80xf32>
    %110 = arith.addf %105, %109 : vector<80x80xf32>
    %c24_59 = arith.constant 24 : index
    %c0_60 = arith.constant 0 : index
    %111 = vector.load %arg13[%c24_59, %c0_60] : memref<112x84xf32, #tpu.memory_space<vmem>>, vector<80x84xf32>
    %c3_61 = arith.constant 3 : index
    %c0_62 = arith.constant 0 : index
    %c0_63 = arith.constant 0 : index
    %112 = vector.load %arg4[%c3_61, %c0_62, %c0_63] : memref<5x84x80xf32, #tpu.memory_space<vmem>>, vector<1x84x80xf32>
    %113 = vector.shape_cast %112 : vector<1x84x80xf32> to vector<84x80xf32>
    %cst_64 = arith.constant dense<0.000000e+00> : vector<80x80xf32>
    %114 = tpu.matmul %111, %113, %cst_64 {dimension_numbers = #tpu.dot_dimension_numbers<[1], [0], [0], [1], [0, 0, 1, 1], [], []>} : vector<80x84xf32>, vector<84x80xf32>, vector<80x80xf32> -> vector<80x80xf32>
    %115 = arith.addf %110, %114 : vector<80x80xf32>
    %c32_65 = arith.constant 32 : index
    %c0_66 = arith.constant 0 : index
    %116 = vector.load %arg13[%c32_65, %c0_66] : memref<112x84xf32, #tpu.memory_space<vmem>>, vector<80x84xf32>
    %c4_67 = arith.constant 4 : index
    %c0_68 = arith.constant 0 : index
    %c0_69 = arith.constant 0 : index
    %117 = vector.load %arg4[%c4_67, %c0_68, %c0_69] : memref<5x84x80xf32, #tpu.memory_space<vmem>>, vector<1x84x80xf32>
    %118 = vector.shape_cast %117 : vector<1x84x80xf32> to vector<84x80xf32>
    %cst_70 = arith.constant dense<0.000000e+00> : vector<80x80xf32>
    %119 = tpu.matmul %116, %118, %cst_70 {dimension_numbers = #tpu.dot_dimension_numbers<[1], [0], [0], [1], [0, 0, 1, 1], [], []>} : vector<80x84xf32>, vector<84x80xf32>, vector<80x80xf32> -> vector<80x80xf32>
    %120 = arith.addf %115, %119 : vector<80x80xf32>
    %c0_71 = arith.constant 0 : index
    %c0_72 = arith.constant 0 : index
    %121 = vector.load %arg5[%c0_71, %c0_72] : memref<1x80xf32, #tpu.memory_space<vmem>>, vector<1x80xf32>
    %122 = vector.shape_cast %121 : vector<1x80xf32> to vector<1x80xf32>
    %123 = vector.broadcast %122 : vector<1x80xf32> to vector<8x80xf32>
    %124 = vector.extract_strided_slice %120 {offsets = [0, 0], sizes = [8, 80], strides = [1, 1]} : vector<80x80xf32> to vector<8x80xf32>
    %125 = vector.extract_strided_slice %120 {offsets = [8, 0], sizes = [8, 80], strides = [1, 1]} : vector<80x80xf32> to vector<8x80xf32>
    %126 = arith.addf %124, %125 : vector<8x80xf32>
    %127 = arith.addf %126, %123 : vector<8x80xf32>
    %c0_73 = arith.constant 0 : index
    %c0_74 = arith.constant 0 : index
    %128 = vector.load %arg14[%c0_73, %c0_74] : memref<40x80xf32, #tpu.memory_space<vmem>>, vector<8x80xf32>
    tpu.vector_store %arg14[%c0_73, %c0_74], %127 {strides = array<i32>} : memref<40x80xf32, #tpu.memory_space<vmem>>, vector<8x80xf32>,
    %129 = vector.extract_strided_slice %120 {offsets = [16, 0], sizes = [8, 80], strides = [1, 1]} : vector<80x80xf32> to vector<8x80xf32>
    %130 = vector.extract_strided_slice %120 {offsets = [24, 0], sizes = [8, 80], strides = [1, 1]} : vector<80x80xf32> to vector<8x80xf32>
    %131 = arith.addf %129, %130 : vector<8x80xf32>
    %132 = arith.addf %131, %123 : vector<8x80xf32>
    %c8_75 = arith.constant 8 : index
    %c0_76 = arith.constant 0 : index
    %133 = vector.load %arg14[%c8_75, %c0_76] : memref<40x80xf32, #tpu.memory_space<vmem>>, vector<8x80xf32>
    tpu.vector_store %arg14[%c8_75, %c0_76], %132 {strides = array<i32>} : memref<40x80xf32, #tpu.memory_space<vmem>>, vector<8x80xf32>,
    %134 = vector.extract_strided_slice %120 {offsets = [32, 0], sizes = [8, 80], strides = [1, 1]} : vector<80x80xf32> to vector<8x80xf32>
    %135 = vector.extract_strided_slice %120 {offsets = [40, 0], sizes = [8, 80], strides = [1, 1]} : vector<80x80xf32> to vector<8x80xf32>
    %136 = arith.addf %134, %135 : vector<8x80xf32>
    %137 = arith.addf %136, %123 : vector<8x80xf32>
    %c16_77 = arith.constant 16 : index
    %c0_78 = arith.constant 0 : index
    %138 = vector.load %arg14[%c16_77, %c0_78] : memref<40x80xf32, #tpu.memory_space<vmem>>, vector<8x80xf32>
    tpu.vector_store %arg14[%c16_77, %c0_78], %137 {strides = array<i32>} : memref<40x80xf32, #tpu.memory_space<vmem>>, vector<8x80xf32>,
    %139 = vector.extract_strided_slice %120 {offsets = [48, 0], sizes = [8, 80], strides = [1, 1]} : vector<80x80xf32> to vector<8x80xf32>
    %140 = vector.extract_strided_slice %120 {offsets = [56, 0], sizes = [8, 80], strides = [1, 1]} : vector<80x80xf32> to vector<8x80xf32>
    %141 = arith.addf %139, %140 : vector<8x80xf32>
    %142 = arith.addf %141, %123 : vector<8x80xf32>
    %c24_79 = arith.constant 24 : index
    %c0_80 = arith.constant 0 : index
    %143 = vector.load %arg14[%c24_79, %c0_80] : memref<40x80xf32, #tpu.memory_space<vmem>>, vector<8x80xf32>
    tpu.vector_store %arg14[%c24_79, %c0_80], %142 {strides = array<i32>} : memref<40x80xf32, #tpu.memory_space<vmem>>, vector<8x80xf32>,
    %144 = vector.extract_strided_slice %120 {offsets = [64, 0], sizes = [8, 80], strides = [1, 1]} : vector<80x80xf32> to vector<8x80xf32>
    %145 = vector.extract_strided_slice %120 {offsets = [72, 0], sizes = [8, 80], strides = [1, 1]} : vector<80x80xf32> to vector<8x80xf32>
    %146 = arith.addf %144, %145 : vector<8x80xf32>
    %147 = arith.addf %146, %123 : vector<8x80xf32>
    %c32_81 = arith.constant 32 : index
    %c0_82 = arith.constant 0 : index
    %148 = vector.load %arg14[%c32_81, %c0_82] : memref<40x80xf32, #tpu.memory_space<vmem>>, vector<8x80xf32>
    tpu.vector_store %arg14[%c32_81, %c0_82], %147 {strides = array<i32>} : memref<40x80xf32, #tpu.memory_space<vmem>>, vector<8x80xf32>,
    %c0_83 = arith.constant 0 : index
    %c0_84 = arith.constant 0 : index
    %149 = vector.load %arg14[%c0_83, %c0_84] : memref<40x80xf32, #tpu.memory_space<vmem>>, vector<8x80xf32>
    %c0_85 = arith.constant 0 : index
    %c0_86 = arith.constant 0 : index
    %c0_87 = arith.constant 0 : index
    %150 = vector.load %arg6[%c0_85, %c0_86, %c0_87] : memref<5x80x128xf32, #tpu.memory_space<vmem>>, vector<1x80x128xf32>
    %151 = vector.shape_cast %150 : vector<1x80x128xf32> to vector<80x128xf32>
    %cst_88 = arith.constant dense<0.000000e+00> : vector<8x128xf32>
    %152 = tpu.matmul %149, %151, %cst_88 {dimension_numbers = #tpu.dot_dimension_numbers<[1], [0], [0], [1], [0, 0, 1, 1], [], []>} : vector<8x80xf32>, vector<80x128xf32>, vector<8x128xf32> -> vector<8x128xf32>
    %c8_89 = arith.constant 8 : index
    %c0_90 = arith.constant 0 : index
    %153 = vector.load %arg14[%c8_89, %c0_90] : memref<40x80xf32, #tpu.memory_space<vmem>>, vector<8x80xf32>
    %c1_91 = arith.constant 1 : index
    %c0_92 = arith.constant 0 : index
    %c0_93 = arith.constant 0 : index
    %154 = vector.load %arg6[%c1_91, %c0_92, %c0_93] : memref<5x80x128xf32, #tpu.memory_space<vmem>>, vector<1x80x128xf32>
    %155 = vector.shape_cast %154 : vector<1x80x128xf32> to vector<80x128xf32>
    %cst_94 = arith.constant dense<0.000000e+00> : vector<8x128xf32>
    %156 = tpu.matmul %153, %155, %cst_94 {dimension_numbers = #tpu.dot_dimension_numbers<[1], [0], [0], [1], [0, 0, 1, 1], [], []>} : vector<8x80xf32>, vector<80x128xf32>, vector<8x128xf32> -> vector<8x128xf32>
    %157 = arith.addf %152, %156 : vector<8x128xf32>
    %c16_95 = arith.constant 16 : index
    %c0_96 = arith.constant 0 : index
    %158 = vector.load %arg14[%c16_95, %c0_96] : memref<40x80xf32, #tpu.memory_space<vmem>>, vector<8x80xf32>
    %c2_97 = arith.constant 2 : index
    %c0_98 = arith.constant 0 : index
    %c0_99 = arith.constant 0 : index
    %159 = vector.load %arg6[%c2_97, %c0_98, %c0_99] : memref<5x80x128xf32, #tpu.memory_space<vmem>>, vector<1x80x128xf32>
    %160 = vector.shape_cast %159 : vector<1x80x128xf32> to vector<80x128xf32>
    %cst_100 = arith.constant dense<0.000000e+00> : vector<8x128xf32>
    %161 = tpu.matmul %158, %160, %cst_100 {dimension_numbers = #tpu.dot_dimension_numbers<[1], [0], [0], [1], [0, 0, 1, 1], [], []>} : vector<8x80xf32>, vector<80x128xf32>, vector<8x128xf32> -> vector<8x128xf32>
    %162 = arith.addf %157, %161 : vector<8x128xf32>
    %c24_101 = arith.constant 24 : index
    %c0_102 = arith.constant 0 : index
    %163 = vector.load %arg14[%c24_101, %c0_102] : memref<40x80xf32, #tpu.memory_space<vmem>>, vector<8x80xf32>
    %c3_103 = arith.constant 3 : index
    %c0_104 = arith.constant 0 : index
    %c0_105 = arith.constant 0 : index
    %164 = vector.load %arg6[%c3_103, %c0_104, %c0_105] : memref<5x80x128xf32, #tpu.memory_space<vmem>>, vector<1x80x128xf32>
    %165 = vector.shape_cast %164 : vector<1x80x128xf32> to vector<80x128xf32>
    %cst_106 = arith.constant dense<0.000000e+00> : vector<8x128xf32>
    %166 = tpu.matmul %163, %165, %cst_106 {dimension_numbers = #tpu.dot_dimension_numbers<[1], [0], [0], [1], [0, 0, 1, 1], [], []>} : vector<8x80xf32>, vector<80x128xf32>, vector<8x128xf32> -> vector<8x128xf32>
    %167 = arith.addf %162, %166 : vector<8x128xf32>
    %c32_107 = arith.constant 32 : index
    %c0_108 = arith.constant 0 : index
    %168 = vector.load %arg14[%c32_107, %c0_108] : memref<40x80xf32, #tpu.memory_space<vmem>>, vector<8x80xf32>
    %c4_109 = arith.constant 4 : index
    %c0_110 = arith.constant 0 : index
    %c0_111 = arith.constant 0 : index
    %169 = vector.load %arg6[%c4_109, %c0_110, %c0_111] : memref<5x80x128xf32, #tpu.memory_space<vmem>>, vector<1x80x128xf32>
    %170 = vector.shape_cast %169 : vector<1x80x128xf32> to vector<80x128xf32>
    %cst_112 = arith.constant dense<0.000000e+00> : vector<8x128xf32>
    %171 = tpu.matmul %168, %170, %cst_112 {dimension_numbers = #tpu.dot_dimension_numbers<[1], [0], [0], [1], [0, 0, 1, 1], [], []>} : vector<8x80xf32>, vector<80x128xf32>, vector<8x128xf32> -> vector<8x128xf32>
    %172 = arith.addf %167, %171 : vector<8x128xf32>
    %c0_113 = arith.constant 0 : index
    %c0_114 = arith.constant 0 : index
    %173 = vector.load %arg7[%c0_113, %c0_114] : memref<1x128xf32, #tpu.memory_space<vmem>>, vector<1x128xf32>
    %174 = vector.broadcast %173 : vector<1x128xf32> to vector<8x128xf32>
    %175 = arith.addf %172, %174 : vector<8x128xf32>
    %cst_115 = arith.constant 0.000000e+00 : f32
    %176 = vector.broadcast %cst_115 : f32 to vector<8x128xf32>
    %177 = arith.maximumf %175, %176 : vector<8x128xf32>
    %c0_116 = arith.constant 0 : index
    %c0_117 = arith.constant 0 : index
    %178 = vector.load %arg8[%c0_116, %c0_117] : memref<128x128xf32, #tpu.memory_space<vmem>>, vector<128x128xf32>
    %cst_118 = arith.constant dense<0.000000e+00> : vector<8x128xf32>
    %179 = tpu.matmul %177, %178, %cst_118 {dimension_numbers = #tpu.dot_dimension_numbers<[1], [0], [0], [1], [0, 0, 1, 1], [], []>} : vector<8x128xf32>, vector<128x128xf32>, vector<8x128xf32> -> vector<8x128xf32>
    %c0_119 = arith.constant 0 : index
    %c0_120 = arith.constant 0 : index
    %180 = vector.load %arg9[%c0_119, %c0_120] : memref<1x128xf32, #tpu.memory_space<vmem>>, vector<1x128xf32>
    %181 = vector.broadcast %180 : vector<1x128xf32> to vector<8x128xf32>
    %182 = arith.addf %179, %181 : vector<8x128xf32>
    %cst_121 = arith.constant 0.000000e+00 : f32
    %183 = vector.broadcast %cst_121 : f32 to vector<8x128xf32>
    %184 = arith.maximumf %182, %183 : vector<8x128xf32>
    %c0_122 = arith.constant 0 : index
    %c0_123 = arith.constant 0 : index
    %185 = vector.load %arg10[%c0_122, %c0_123] : memref<128x128xf32, #tpu.memory_space<vmem>>, vector<128x128xf32>
    %cst_124 = arith.constant dense<0.000000e+00> : vector<8x128xf32>
    %186 = tpu.matmul %184, %185, %cst_124 {dimension_numbers = #tpu.dot_dimension_numbers<[1], [0], [0], [1], [0, 0, 1, 1], [], []>} : vector<8x128xf32>, vector<128x128xf32>, vector<8x128xf32> -> vector<8x128xf32>
    %c0_125 = arith.constant 0 : index
    %c0_126 = arith.constant 0 : index
    %187 = vector.load %arg11[%c0_125, %c0_126] : memref<1x128xf32, #tpu.memory_space<vmem>>, vector<1x128xf32>
    %188 = vector.broadcast %187 : vector<1x128xf32> to vector<8x128xf32>
    %189 = arith.addf %186, %188 : vector<8x128xf32>
    %c0_127 = arith.constant 0 : index
    %c0_128 = arith.constant 0 : index
    %190 = vector.load %arg12[%c0_127, %c0_128] : memref<8x128xf32, #tpu.memory_space<vmem>>, vector<8x128xf32>
    tpu.vector_store %arg12[%c0_127, %c0_128], %189 {strides = array<i32>} : memref<8x128xf32, #tpu.memory_space<vmem>>, vector<8x128xf32>,
    return
  }
  func.func @transform_0(%arg0: i32) -> (i32, i32) {
    %c0_i32 = arith.constant 0 : i32
    %c0_i32_0 = arith.constant 0 : i32
    return %arg0, %c0_i32 : i32, i32
  }
  func.func @transform_1(%arg0: i32) -> (i32, i32, i32) {
    %c0_i32 = arith.constant 0 : i32
    %c0_i32_0 = arith.constant 0 : i32
    %c0_i32_1 = arith.constant 0 : i32
    %c0_i32_2 = arith.constant 0 : i32
    return %c0_i32, %c0_i32_0, %c0_i32_1 : i32, i32, i32
  }
  func.func @transform_2(%arg0: i32) -> (i32, i32) {
    %c0_i32 = arith.constant 0 : i32
    %c0_i32_0 = arith.constant 0 : i32
    %c0_i32_1 = arith.constant 0 : i32
    return %c0_i32, %c0_i32_0 : i32, i32
  }
  func.func @transform_3(%arg0: i32) -> (i32, i32, i32) {
    %c0_i32 = arith.constant 0 : i32
    %c0_i32_0 = arith.constant 0 : i32
    %c0_i32_1 = arith.constant 0 : i32
    %c0_i32_2 = arith.constant 0 : i32
    return %c0_i32, %c0_i32_0, %c0_i32_1 : i32, i32, i32
  }
  func.func @transform_4(%arg0: i32) -> (i32, i32) {
    %c0_i32 = arith.constant 0 : i32
    %c0_i32_0 = arith.constant 0 : i32
    %c0_i32_1 = arith.constant 0 : i32
    return %c0_i32, %c0_i32_0 : i32, i32
  }
  func.func @transform_5(%arg0: i32) -> (i32, i32, i32) {
    %c0_i32 = arith.constant 0 : i32
    %c0_i32_0 = arith.constant 0 : i32
    %c0_i32_1 = arith.constant 0 : i32
    %c0_i32_2 = arith.constant 0 : i32
    return %c0_i32, %c0_i32_0, %c0_i32_1 : i32, i32, i32
  }
  func.func @transform_6(%arg0: i32) -> (i32, i32) {
    %c0_i32 = arith.constant 0 : i32
    %c0_i32_0 = arith.constant 0 : i32
    %c0_i32_1 = arith.constant 0 : i32
    return %c0_i32, %c0_i32_0 : i32, i32
  }
  func.func @transform_7(%arg0: i32) -> (i32, i32) {
    %c0_i32 = arith.constant 0 : i32
    %c0_i32_0 = arith.constant 0 : i32
    %c0_i32_1 = arith.constant 0 : i32
    return %c0_i32, %c0_i32_0 : i32, i32
  }
  func.func @transform_8(%arg0: i32) -> (i32, i32) {
    %c0_i32 = arith.constant 0 : i32
    %c0_i32_0 = arith.constant 0 : i32
    %c0_i32_1 = arith.constant 0 : i32
    return %c0_i32, %c0_i32_0 : i32, i32
  }
  func.func @transform_9(%arg0: i32) -> (i32, i32) {
    %c0_i32 = arith.constant 0 : i32
    %c0_i32_0 = arith.constant 0 : i32
    %c0_i32_1 = arith.constant 0 : i32
    return %c0_i32, %c0_i32_0 : i32, i32
  }
  func.func @transform_10(%arg0: i32) -> (i32, i32) {
    %c0_i32 = arith.constant 0 : i32
    %c0_i32_0 = arith.constant 0 : i32
    %c0_i32_1 = arith.constant 0 : i32
    return %c0_i32, %c0_i32_0 : i32, i32
  }
  func.func @transform_11(%arg0: i32) -> (i32, i32) {
    %c0_i32 = arith.constant 0 : i32
    %c0_i32_0 = arith.constant 0 : i32
    return %arg0, %c0_i32 : i32, i32
  }
}

</mosaic_0001>

<bundles_post_ra>
// kernel: lenet5_forward.1
= control target key start
LH: loop header
LB: loop body
LE: loop exit
PB: predicated region body
PF: predicated region fallthrough
CT: control target
= control target key end

     0   :  { %vm161_vm0 = vcmask 1043456   ;;  %vm76_vm1 = vcmask 228352   ;;  %vm4897_vm2 = vmmov 1   ;;  %vm1649_vm4 = vcmask 687104   ;;  %s6118_s1 = inlined_call_operand.vmem [shape: f32[5,28,84], index: 1, kind: input, shape index: {}]   ;;  %s6119_s0 = inlined_call_operand.vmem [shape: f32[256,28], index: 0, kind: input, shape index: {}]   ;;  %s6120_s3 = inlined_call_operand.vmem [shape: f32[5,84,80], index: 3, kind: input, shape index: {}]   ;;  %s6121_s2 = inlined_call_operand.vmem [shape: f32[1,84], index: 2, kind: input, shape index: {}]   ;;  %s6122_s5 = inlined_call_operand.vmem [shape: f32[5,80,128], index: 5, kind: input, shape index: {}]   ;;  %s6123_s4 = inlined_call_operand.vmem [shape: f32[1,80], index: 4, kind: input, shape index: {}]   ;;  %s6124_s7 = inlined_call_operand.vmem [shape: f32[128,128], index: 7, kind: input, shape index: {}]   ;;  %s6125_s6 = inlined_call_operand.vmem [shape: f32[1,128], index: 6, kind: input, shape index: {}]   ;;  %s6126_s9 = inlined_call_operand.vmem [shape: f32[128,128], index: 9, kind: input, shape index: {}]   ;;  %s6127_s8 = inlined_call_operand.vmem [shape: f32[1,128], index: 8, kind: input, shape index: {}]   ;;  %s6128_s10 = inlined_call_operand.vmem [shape: f32[1,128], index: 10, kind: input, shape index: {}]   ;;  %s6129_s11 = inlined_call_operand.vmem [shape: f32[8,128], index: 11, kind: output, shape index: {}]  }
   0x1   :  { %v3184_v0 = vld [vmem:[%s6118_s1 + $0x20] sm:$0xff]  ;;  %v3185_v1 = vld [vmem:[%s6118_s1 + $0x28] sm:$0xff]  ;;  %v3186_v2 = vld [vmem:[%s6118_s1 + $0x30] sm:$0xff]  ;;  %vm4899_vm5 = vmmov 0   ;;  %vm2542_vm6 = vcmask 654336  }
   0x2   :  { %v4468_v3 = vpack.c.bf16 %v3185_v1, %v3184_v0  ;;  %v3187_v4 = vld [vmem:[%s6118_s1 + $0x38] sm:$0xf]  ;;  %v4976_v5 = vld [vmem:[%s6119_s0 + $0x8] sm:$0xff]  ;;  %vm4979_vm3 = vmpackc.low %vm161_vm0, %vm4897_vm2 }
   0x3   :  { %v4472_v6 = vpack.c.bf16 %v3187_v4, %v3186_v2  ;;  %3856 = vmatprep.mubr.msk.f32.mxu0 %vm76_vm1, %v4976_v5  ;;  %v66_v8 = vld [vmem:[%s6118_s1] sm:$0xff]  ;;  %v67_v9 = vld [vmem:[%s6118_s1 + $0x8] sm:$0xff]  ;;  %v68_v11 = vld [vmem:[%s6118_s1 + $0x10] sm:$0xff] }
   0x4   :  { %4469 = vmatprep.subr.bf16.mxu0 %v4468_v3  ;;  %v4478_v10 = vpack.c.bf16 %v67_v9, %v66_v8  ;;  %v5001_v12 = vld [vmem:[%s6119_s0 + $0x10] sm:$0xff]  ;;  %v69_v13 = vld [vmem:[%s6118_s1 + $0x18] sm:$0xf]  ;;  %v5018_v16 = vld [vmem:[%s6119_s0 + $0x20] sm:$0xff] }
   0x5   :  { %4471 = vmatpush3.bf16.msra.mxu0 %v4468_v3  ;;  %v5009_v14 = vld [vmem:[%s6119_s0 + $0x18] sm:$0xff]  ;;  %v4482_v15 = vpack.c.bf16 %v69_v13, %v68_v11  ;;  %v3246_v17 = vld [vmem:[%s6118_s1 + $0x40] sm:$0xff]  ;;  %v5026_v18 = vld [vmem:[%s6119_s0 + $0x28] sm:$0xff] }
   0x6   :  { %4474 = vmatprep.subr.msk.bf16.mxu0 %vm4979_vm3, %v4472_v6  ;;  %v3247_v19 = vld [vmem:[%s6118_s1 + $0x48] sm:$0xff]  ;;  %v5040_v21 = vld [vmem:[%s6119_s0 + $0x30] sm:$0xff]  ;;  %v5047_v22 = vld [vmem:[%s6119_s0 + $0x38] sm:$0xff] }
   0x7   :  { %v4488_v20 = vpack.c.bf16 %v3247_v19, %v3246_v17  ;;  %v5056_v23 = vld [vmem:[%s6119_s0 + $0x40] sm:$0xff]  ;;  %v5061_v24 = vld [vmem:[%s6119_s0 + $0x48] sm:$0xff]  ;;  %v5070_v25 = vld [vmem:[%s6119_s0 + $0x50] sm:$0xff] }
   0x8   :  { %v5075_v26 = vld [vmem:[%s6119_s0 + $0x58] sm:$0xff]  ;;  %v5084_v27 = vld [vmem:[%s6119_s0 + $0x60] sm:$0xff]  ;;  %v5089_v28 = vld [vmem:[%s6119_s0 + $0x68] sm:$0xff] }
   0x9   :  { %4477 = vmatpush3.bf16.msk.msra.mxu0 %vm4979_vm3, %v4472_v6  ;;  %v5098_v29 = vld [vmem:[%s6119_s0 + $0x70] sm:$0xff]  ;;  %v5103_v30 = vld [vmem:[%s6119_s0 + $0x78] sm:$0xff]  ;;  %v5112_v31 = vld [vmem:[%s6119_s0 + $0x80] sm:$0xff] }
   0xa   :  { %4479 = vmatprep.subr.bf16.mxu0 %v4478_v10  ;;  %v5117_v32 = vld [vmem:[%s6119_s0 + $0x88] sm:$0xff]  ;;  %v5126_v33 = vld [vmem:[%s6119_s0 + $0x90] sm:$0xff]  ;;  %v5131_v34 = vld [vmem:[%s6119_s0 + $0x98] sm:$0xff] }
   0xb   :  { %v5140_v35 = vld [vmem:[%s6119_s0 + $0xa0] sm:$0xff]  ;;  %v5145_v36 = vld [vmem:[%s6119_s0 + $0xa8] sm:$0xff]  ;;  %v5154_v37 = vld [vmem:[%s6119_s0 + $0xb0] sm:$0xff] }
   0xc   :  { %3857 = vmatmul.mubr.msk.f32.vlgmr.msra.gmra.mrb[0].mxu0 %vm76_vm1, %v5001_v12  ;;  %v5159_v38 = vld [vmem:[%s6119_s0 + $0xb8] sm:$0xff]  ;;  %v5168_v39 = vld [vmem:[%s6119_s0 + $0xc0] sm:$0xff]  ;;  %v5173_v40 = vld [vmem:[%s6119_s0 + $0xc8] sm:$0xff] }
   0xd   :  { %4481 = vmatpush3.bf16.msra.mxu0 %v4478_v10  ;;  %3859 = vmatprep.mubr.msk.f32.mxu0 %vm76_vm1, %v5009_v14  ;;  %v5182_v41 = vld [vmem:[%s6119_s0 + $0xd0] sm:$0xff]  ;;  %v5187_v42 = vld [vmem:[%s6119_s0 + $0xd8] sm:$0xff]  ;;  %v5196_v43 = vld [vmem:[%s6119_s0 + $0xe0] sm:$0xff] }
   0xe   :  { %4484 = vmatprep.subr.msk.bf16.mxu0 %vm4979_vm3, %v4482_v15  ;;  %v38_v44 = vld [vmem:[%s6119_s0] sm:$0xff]  ;;  %v3248_v45 = vld [vmem:[%s6118_s1 + $0x50] sm:$0xff]  ;;  %v3249_v46 = vld [vmem:[%s6118_s1 + $0x58] sm:$0xf] }
   0xf   :  { %v4492_v47 = vpack.c.bf16 %v3249_v46, %v3248_v45  ;;  %v3279_v48 = vld [vmem:[%s6118_s1 + $0x60] sm:$0xff]  ;;  %v3280_v49 = vld [vmem:[%s6118_s1 + $0x68] sm:$0xff]  ;;  %v3281_v51 = vld [vmem:[%s6118_s1 + $0x70] sm:$0xff] }
  0x10   :  { %3860 = vmatmul.mubr.msk.f32.gmra.mrb[2].mxu0 %vm76_vm1, %v5018_v16  ;;  %v4498_v50 = vpack.c.bf16 %v3280_v49, %v3279_v48  ;;  %v3282_v52 = vld [vmem:[%s6118_s1 + $0x78] sm:$0xf]  ;;  %v3312_v54 = vld [vmem:[%s6118_s1 + $0x80] sm:$0xff]  ;;  %v3313_v55 = vld [vmem:[%s6118_s1 + $0x88] sm:$0xff] }
  0x11   :  { %3862 = vmatprep.mubr.msk.f32.mxu0 %vm76_vm1, %v5026_v18  ;;  %4487 = vmatpush3.bf16.msk.msra.mxu0 %vm4979_vm3, %v4482_v15  ;;  %v4502_v53 = vpack.c.bf16 %v3282_v52, %v3281_v51  ;;  %v4508_v56 = vpack.c.bf16 %v3313_v55, %v3312_v54  ;;  %v608_v57 = vld [vmem:[%s6119_s0 + $0xe8] sm:$0xff]  ;;  %v3314_v58 = vld [vmem:[%s6118_s1 + $0x90] sm:$0xff]  ;;  %v3315_v59 = vld [vmem:[%s6118_s1 + $0x98] sm:$0xf] }
  0x12   :  { %4489 = vmatprep.subr.bf16.mxu0 %v4488_v20  ;;  %v4512_v60 = vpack.c.bf16 %v3315_v59, %v3314_v58  ;;  %v961_v61 = vld [vmem:[%s6119_s0 + $0xf0] sm:$0xff]  ;;  %v1314_v62 = vld [vmem:[%s6119_s0 + $0xf8] sm:$0xff]  ;;  %v3347_v0 = vld [vmem:[%s6120_s3 + $0x60] sm:$0xff] }
  0x13   :  { %v3346_v63 = vld [vmem:[%s6120_s3 + $0x58] sm:$0xff]  ;;  %v3348_v2 = vld [vmem:[%s6120_s3 + $0x68] sm:$0xff]  ;;  %v3349_v3 = vld [vmem:[%s6120_s3 + $0x70] sm:$0xff] }
  0x14   :  { %3863 = vmatmul.mubr.msk.f32.gmra.mrb[4].mxu0 %vm76_vm1, %v5040_v21  ;;  %v4518_v1 = vpack.c.bf16 %v3347_v0, %v3346_v63  ;;  %v4522_v4 = vpack.c.bf16 %v3349_v3, %v3348_v2  ;;  %v3351_v6 = vld [vmem:[%s6120_s3 + $0x80] sm:$0xff]  ;;  %v3352_v8 = vld [vmem:[%s6120_s3 + $0x88] sm:$0xff]  ;;  %v3353_v9 = vld [vmem:[%s6120_s3 + $0x90] sm:$0xff] }
  0x15   :  { %3865 = vmatprep.mubr.msk.f32.mxu0 %vm76_vm1, %v5047_v22  ;;  %v4530_v10 = vpack.c.bf16 %v3353_v9, %v3352_v8  ;;  %v3354_v11 = vld [vmem:[%s6120_s3 + $0x98] sm:$0xff]  ;;  %v1700_v15 = vld [vmem:[%s6120_s3] sm:$0xff]  ;;  %v1706_v54 = vld [vmem:[%s6120_s3 + $0x30] sm:$0xff] }
  0x16   :  { %4519 = vmatprep.subr.bf16.mxu1 %v4518_v1  ;;  %v1704_v46 = vld [vmem:[%s6120_s3 + $0x20] sm:$0xff]  ;;  %v1707_v55 = vld [vmem:[%s6120_s3 + $0x38] sm:$0xff]  ;;  %v1709_v63 = vld [vmem:[%s6120_s3 + $0x48] sm:$0xff] }
  0x17   :  { %4521 = vmatpush3.bf16.msra.mxu1 %v4518_v1  ;;  %v4550_v59 = vpack.c.bf16 %v1707_v55, %v1706_v54  ;;  %v1710_v9 = vld [vmem:[%s6120_s3 + $0x50] sm:$0xf]  ;;  %v3403_v55 = vld [vmem:[%s6120_s3 + $0x118] sm:$0xff] }
  0x18   :  { %3866 = vmatmul.mubr.msk.f32.gmra.mrb[6].mxu0 %vm76_vm1, %v5056_v23  ;;  %4523 = vmatprep.subr.bf16.mxu1 %v4522_v4  ;;  %v3402_v54 = vld [vmem:[%s6120_s3 + $0x110] sm:$0xff] }
  0x19   :  { %3868 = vmatprep.mubr.msk.f32.mxu0 %vm76_vm1, %v5061_v24 }
  0x1b   :  { %4525 = vmatpush3.bf16.msra.mxu1 %v4522_v4 }
  0x1c   :  { %3869 = vmatmul.mubr.msk.f32.gmra.mrb[8].mxu0 %vm76_vm1, %v5070_v25 }
  0x1d   :  { %3871 = vmatprep.mubr.msk.f32.mxu0 %vm76_vm1, %v5075_v26 }
  0x20   :  { %3872 = vmatmul.mubr.msk.f32.gmra.mrb[10].mxu0 %vm76_vm1, %v5084_v27 }
  0x21   :  { %3874 = vmatprep.mubr.msk.f32.mxu0 %vm76_vm1, %v5089_v28 }
  0x24   :  { %3875 = vmatmul.mubr.msk.f32.gmra.mrb[12].mxu0 %vm76_vm1, %v5098_v29 }
  0x25   :  { %3877 = vmatprep.mubr.msk.f32.mxu0 %vm76_vm1, %v5103_v30 }
  0x28   :  { %3878 = vmatmul.mubr.msk.f32.gmra.mrb[14].mxu0 %vm76_vm1, %v5112_v31 }
  0x29   :  { %3880 = vmatprep.mubr.msk.f32.mxu0 %vm76_vm1, %v5117_v32 }
  0x2c   :  { %3881 = vmatmul.mubr.msk.f32.gmra.mrb[16].mxu0 %vm76_vm1, %v5126_v33 }
  0x2d   :  { %3883 = vmatprep.mubr.msk.f32.mxu0 %vm76_vm1, %v5131_v34 }
  0x30   :  { %3884 = vmatmul.mubr.msk.f32.gmra.mrb[18].mxu0 %vm76_vm1, %v5140_v35 }
  0x31   :  { %3886 = vmatprep.mubr.msk.f32.mxu0 %vm76_vm1, %v5145_v36 }
  0x34   :  { %3887 = vmatmul.mubr.msk.f32.gmra.mrb[20].mxu0 %vm76_vm1, %v5154_v37 }
  0x35   :  { %3889 = vmatprep.mubr.msk.f32.mxu0 %vm76_vm1, %v5159_v38 }
  0x38   :  { %3890 = vmatmul.mubr.msk.f32.gmra.mrb[22].mxu0 %vm76_vm1, %v5168_v39 }
  0x39   :  { %3892 = vmatprep.mubr.msk.f32.mxu0 %vm76_vm1, %v5173_v40 }
  0x3c   :  { %3893 = vmatmul.mubr.msk.f32.gmra.mrb[24].mxu0 %vm76_vm1, %v5182_v41 }
  0x3d   :  { %3895 = vmatprep.mubr.msk.f32.mxu0 %vm76_vm1, %v5187_v42 }
  0x40   :  { %3896 = vmatmul.mubr.msk.f32.gmra.mrb[26].mxu0 %vm76_vm1, %v5196_v43 }
  0x41   :  { %3906 = vmatprep.mubr.msk.f32.mxu0 %vm76_vm1, %v38_v44 }
  0x44   :  { %3907 = vmatmul.mubr.msk.f32.vlgmr.msra.gmra.mrb[0].mxu0 %vm76_vm1, %v4976_v5  ;;  %v3350_v5 = vld [vmem:[%s6120_s3 + $0x78] sm:$0xff] }
  0x45   :  { %4491 = vmatpush3.bf16.msra.mxu0 %v4488_v20  ;;  %3909 = vmatprep.mubr.msk.f32.mxu0 %vm76_vm1, %v5001_v12  ;;  %v4526_v7 = vpack.c.bf16 %v3351_v6, %v3350_v5  ;;  %v5515_v20 = vld [vmem:[%s6121_s2] ss:$0 sm:$0xff] }
  0x46   :  { %4494 = vmatprep.subr.msk.bf16.mxu0 %vm4979_vm3, %v4492_v47 }
  0x47   :  { %4527 = vmatprep.subr.bf16.mxu1 %v4526_v7 }
  0x48   :  { %3910 = vmatmul.mubr.msk.f32.gmra.mrb[2].mxu0 %vm76_vm1, %v5009_v14  ;;  %4529 = vmatpush3.bf16.msra.mxu1 %v4526_v7 }
  0x49   :  { %3912 = vmatprep.mubr.msk.f32.mxu0 %vm76_vm1, %v5018_v16  ;;  %4497 = vmatpush3.bf16.msk.msra.mxu0 %vm4979_vm3, %v4492_v47  ;;  %v1705_v47 = vld [vmem:[%s6120_s3 + $0x28] sm:$0xff] }
  0x4a   :  { %4499 = vmatprep.subr.bf16.mxu0 %v4498_v50  ;;  %4531 = vmatprep.subr.bf16.mxu1 %v4530_v10  ;;  %v4546_v51 = vpack.c.bf16 %v1705_v47, %v1704_v46  ;;  %v3385_v46 = vld [vmem:[%s6120_s3 + $0xe0] sm:$0xff]  ;;  %v3386_v47 = vld [vmem:[%s6120_s3 + $0xe8] sm:$0xff] }
  0x4c   :  { %3913 = vmatmul.mubr.msk.f32.gmra.mrb[4].mxu0 %vm76_vm1, %v5026_v18  ;;  %4533 = vmatpush3.bf16.msra.mxu1 %v4530_v10 }
  0x4d   :  { %3915 = vmatprep.mubr.msk.f32.mxu0 %vm76_vm1, %v5040_v21 }
  0x50   :  { %3916 = vmatmul.mubr.msk.f32.gmra.mrb[6].mxu0 %vm76_vm1, %v5047_v22 }
  0x51   :  { %3918 = vmatprep.mubr.msk.f32.mxu0 %vm76_vm1, %v5056_v23 }
  0x54   :  { %3919 = vmatmul.mubr.msk.f32.gmra.mrb[8].mxu0 %vm76_vm1, %v5061_v24 }
  0x55   :  { %3921 = vmatprep.mubr.msk.f32.mxu0 %vm76_vm1, %v5070_v25 }
  0x58   :  { %3922 = vmatmul.mubr.msk.f32.gmra.mrb[10].mxu0 %vm76_vm1, %v5075_v26 }
  0x59   :  { %3924 = vmatprep.mubr.msk.f32.mxu0 %vm76_vm1, %v5084_v27 }
  0x5c   :  { %3925 = vmatmul.mubr.msk.f32.gmra.mrb[12].mxu0 %vm76_vm1, %v5089_v28 }
  0x5d   :  { %3927 = vmatprep.mubr.msk.f32.mxu0 %vm76_vm1, %v5098_v29 }
  0x60   :  { %3928 = vmatmul.mubr.msk.f32.gmra.mrb[14].mxu0 %vm76_vm1, %v5103_v30 }
  0x61   :  { %3930 = vmatprep.mubr.msk.f32.mxu0 %vm76_vm1, %v5112_v31 }
  0x64   :  { %3931 = vmatmul.mubr.msk.f32.gmra.mrb[16].mxu0 %vm76_vm1, %v5117_v32 }
  0x65   :  { %3933 = vmatprep.mubr.msk.f32.mxu0 %vm76_vm1, %v5126_v33 }
  0x68   :  { %3934 = vmatmul.mubr.msk.f32.gmra.mrb[18].mxu0 %vm76_vm1, %v5131_v34 }
  0x69   :  { %3936 = vmatprep.mubr.msk.f32.mxu0 %vm76_vm1, %v5140_v35 }
  0x6c   :  { %3937 = vmatmul.mubr.msk.f32.gmra.mrb[20].mxu0 %vm76_vm1, %v5145_v36 }
  0x6d   :  { %3939 = vmatprep.mubr.msk.f32.mxu0 %vm76_vm1, %v5154_v37 }
  0x70   :  { %3940 = vmatmul.mubr.msk.f32.gmra.mrb[22].mxu0 %vm76_vm1, %v5159_v38 }
  0x71   :  { %3942 = vmatprep.mubr.msk.f32.mxu0 %vm76_vm1, %v5168_v39 }
  0x74   :  { %3943 = vmatmul.mubr.msk.f32.gmra.mrb[24].mxu0 %vm76_vm1, %v5173_v40 }
  0x75   :  { %3945 = vmatprep.mubr.msk.f32.mxu0 %vm76_vm1, %v5182_v41 }
  0x78   :  { %3946 = vmatmul.mubr.msk.f32.gmra.mrb[26].mxu0 %vm76_vm1, %v5187_v42 }
  0x79   :  { %3956 = vmatprep.mubr.msk.f32.mxu0 %vm76_vm1, %v5001_v12  ;;  %v3355_v12 = vld [vmem:[%s6120_s3 + $0xa0] sm:$0xff] }
  0x7a   :  { %v4534_v13 = vpack.c.bf16 %v3355_v12, %v3354_v11  ;;  %v3379_v12 = vld [vmem:[%s6120_s3 + $0xb0] sm:$0xff] }
  0x7c   :  { %3957 = vmatmul.mubr.msk.f32.vlgmr.msra.gmra.mrb[0].mxu0 %vm76_vm1, %v5009_v14  ;;  %4535 = vmatprep.subr.bf16.mxu1 %v4534_v13 }
  0x7d   :  { %4501 = vmatpush3.bf16.msra.mxu0 %v4498_v50  ;;  %3959 = vmatprep.mubr.msk.f32.mxu0 %vm76_vm1, %v5018_v16 }
  0x7e   :  { %4504 = vmatprep.subr.msk.bf16.mxu0 %vm4979_vm3, %v4502_v53  ;;  %4537 = vmatpush3.bf16.msra.mxu1 %v4534_v13  ;;  %v3380_v13 = vld [vmem:[%s6120_s3 + $0xb8] sm:$0xff] }
  0x80   :  { %3960 = vmatmul.mubr.msk.f32.gmra.mrb[2].mxu0 %vm76_vm1, %v5026_v18 }
  0x81   :  { %3962 = vmatprep.mubr.msk.f32.mxu0 %vm76_vm1, %v5040_v21  ;;  %4507 = vmatpush3.bf16.msk.msra.mxu0 %vm4979_vm3, %v4502_v53 }
  0x82   :  { %4509 = vmatprep.subr.bf16.mxu0 %v4508_v56 }
  0x84   :  { %3963 = vmatmul.mubr.msk.f32.gmra.mrb[4].mxu0 %vm76_vm1, %v5047_v22 }
  0x85   :  { %3965 = vmatprep.mubr.msk.f32.mxu0 %vm76_vm1, %v5056_v23 }
  0x88   :  { %3966 = vmatmul.mubr.msk.f32.gmra.mrb[6].mxu0 %vm76_vm1, %v5061_v24 }
  0x89   :  { %3968 = vmatprep.mubr.msk.f32.mxu0 %vm76_vm1, %v5070_v25 }
  0x8c   :  { %3969 = vmatmul.mubr.msk.f32.gmra.mrb[8].mxu0 %vm76_vm1, %v5075_v26 }
  0x8d   :  { %3971 = vmatprep.mubr.msk.f32.mxu0 %vm76_vm1, %v5084_v27 }
  0x90   :  { %3972 = vmatmul.mubr.msk.f32.gmra.mrb[10].mxu0 %vm76_vm1, %v5089_v28 }
  0x91   :  { %3974 = vmatprep.mubr.msk.f32.mxu0 %vm76_vm1, %v5098_v29 }
  0x94   :  { %3975 = vmatmul.mubr.msk.f32.gmra.mrb[12].mxu0 %vm76_vm1, %v5103_v30 }
  0x95   :  { %3977 = vmatprep.mubr.msk.f32.mxu0 %vm76_vm1, %v5112_v31 }
  0x98   :  { %3978 = vmatmul.mubr.msk.f32.gmra.mrb[14].mxu0 %vm76_vm1, %v5117_v32 }
  0x99   :  { %3980 = vmatprep.mubr.msk.f32.mxu0 %vm76_vm1, %v5126_v33 }
  0x9c   :  { %3981 = vmatmul.mubr.msk.f32.gmra.mrb[16].mxu0 %vm76_vm1, %v5131_v34 }
  0x9d   :  { %3983 = vmatprep.mubr.msk.f32.mxu0 %vm76_vm1, %v5140_v35 }
  0xa0   :  { %3984 = vmatmul.mubr.msk.f32.gmra.mrb[18].mxu0 %vm76_vm1, %v5145_v36 }
  0xa1   :  { %3986 = vmatprep.mubr.msk.f32.mxu0 %vm76_vm1, %v5154_v37 }
  0xa4   :  { %3987 = vmatmul.mubr.msk.f32.gmra.mrb[20].mxu0 %vm76_vm1, %v5159_v38 }
  0xa5   :  { %3989 = vmatprep.mubr.msk.f32.mxu0 %vm76_vm1, %v5168_v39 }
  0xa8   :  { %3990 = vmatmul.mubr.msk.f32.gmra.mrb[22].mxu0 %vm76_vm1, %v5173_v40 }
  0xa9   :  { %3992 = vmatprep.mubr.msk.f32.mxu0 %vm76_vm1, %v5182_v41 }
  0xac   :  { %3993 = vmatmul.mubr.msk.f32.gmra.mrb[24].mxu0 %vm76_vm1, %v5187_v42 }
  0xad   :  { %3995 = vmatprep.mubr.msk.f32.mxu0 %vm76_vm1, %v5196_v43 }
  0xb0   :  { %3996 = vmatmul.mubr.msk.f32.gmra.mrb[26].mxu0 %vm76_vm1, %v608_v57 }
  0xb1   :  { %4006 = vmatprep.mubr.msk.f32.mxu0 %vm76_vm1, %v5009_v14  ;;  %v3356_v14 = vld [vmem:[%s6120_s3 + $0xa8] sm:$0xf] }
  0xb2   :  { %4118 = vmatprep.subr.msk.mxu1 %vm161_vm0, %v3356_v14 }
  0xb3   :  { %4119 = vmatpush3.msk.msra.mxu1 %vm161_vm0, %v3356_v14 }
  0xb4   :  { %4007 = vmatmul.mubr.msk.f32.vlgmr.msra.gmra.mrb[0].mxu0 %vm76_vm1, %v5018_v16 }
  0xb5   :  { %4511 = vmatpush3.bf16.msra.mxu0 %v4508_v56  ;;  %4009 = vmatprep.mubr.msk.f32.mxu0 %vm76_vm1, %v5026_v18 }
  0xb6   :  { %4514 = vmatprep.subr.msk.bf16.mxu0 %vm4979_vm3, %v4512_v60 }
  0xb8   :  { %4010 = vmatmul.mubr.msk.f32.gmra.mrb[2].mxu0 %vm76_vm1, %v5040_v21 }
  0xb9   :  { %4012 = vmatprep.mubr.msk.f32.mxu0 %vm76_vm1, %v5047_v22  ;;  %4517 = vmatpush3.bf16.msk.msra.mxu0 %vm4979_vm3, %v4512_v60 }
  0xbc   :  { %4013 = vmatmul.mubr.msk.f32.gmra.mrb[4].mxu0 %vm76_vm1, %v5056_v23 }
  0xbd   :  { %4015 = vmatprep.mubr.msk.f32.mxu0 %vm76_vm1, %v5061_v24 }
  0xc0   :  { %4016 = vmatmul.mubr.msk.f32.gmra.mrb[6].mxu0 %vm76_vm1, %v5070_v25 }
  0xc1   :  { %4018 = vmatprep.mubr.msk.f32.mxu0 %vm76_vm1, %v5075_v26 }
  0xc4   :  { %4019 = vmatmul.mubr.msk.f32.gmra.mrb[8].mxu0 %vm76_vm1, %v5084_v27 }
  0xc5   :  { %4021 = vmatprep.mubr.msk.f32.mxu0 %vm76_vm1, %v5089_v28 }
  0xc8   :  { %4022 = vmatmul.mubr.msk.f32.gmra.mrb[10].mxu0 %vm76_vm1, %v5098_v29 }
  0xc9   :  { %4024 = vmatprep.mubr.msk.f32.mxu0 %vm76_vm1, %v5103_v30 }
  0xcc   :  { %4025 = vmatmul.mubr.msk.f32.gmra.mrb[12].mxu0 %vm76_vm1, %v5112_v31 }
  0xcd   :  { %4027 = vmatprep.mubr.msk.f32.mxu0 %vm76_vm1, %v5117_v32 }
  0xd0   :  { %4028 = vmatmul.mubr.msk.f32.gmra.mrb[14].mxu0 %vm76_vm1, %v5126_v33 }
  0xd1   :  { %4030 = vmatprep.mubr.msk.f32.mxu0 %vm76_vm1, %v5131_v34 }
  0xd4   :  { %4031 = vmatmul.mubr.msk.f32.gmra.mrb[16].mxu0 %vm76_vm1, %v5140_v35 }
  0xd5   :  { %4033 = vmatprep.mubr.msk.f32.mxu0 %vm76_vm1, %v5145_v36 }
  0xd8   :  { %4034 = vmatmul.mubr.msk.f32.gmra.mrb[18].mxu0 %vm76_vm1, %v5154_v37 }
  0xd9   :  { %4036 = vmatprep.mubr.msk.f32.mxu0 %vm76_vm1, %v5159_v38 }
  0xdc   :  { %4037 = vmatmul.mubr.msk.f32.gmra.mrb[20].mxu0 %vm76_vm1, %v5168_v39 }
  0xdd   :  { %4039 = vmatprep.mubr.msk.f32.mxu0 %vm76_vm1, %v5173_v40 }
  0xe0   :  { %4040 = vmatmul.mubr.msk.f32.gmra.mrb[22].mxu0 %vm76_vm1, %v5182_v41 }
  0xe1   :  { %4042 = vmatprep.mubr.msk.f32.mxu0 %vm76_vm1, %v5187_v42 }
  0xe4   :  { %4043 = vmatmul.mubr.msk.f32.gmra.mrb[24].mxu0 %vm76_vm1, %v5196_v43 }
  0xe5   :  { %4045 = vmatprep.mubr.msk.f32.mxu0 %vm76_vm1, %v608_v57 }
  0xe8   :  { %4046 = vmatmul.mubr.msk.f32.gmra.mrb[26].mxu0 %vm76_vm1, %v961_v61 }
  0xe9   :  { %4056 = vmatprep.mubr.msk.f32.mxu0 %vm76_vm1, %v5018_v16  ;;  %v1701_v16 = vld [vmem:[%s6120_s3 + $0x8] sm:$0xff] }
  0xea   :  { %v4538_v17 = vpack.c.bf16 %v1701_v16, %v1700_v15 }
  0xec   :  { %4057 = vmatmul.mubr.msk.f32.vlgmr.msra.gmra.mrb[0].mxu0 %vm76_vm1, %v5026_v18  ;;  %4539 = vmatprep.subr.bf16.mxu1 %v4538_v17 }
  0xed   :  { %4059 = vmatprep.mubr.msk.f32.mxu0 %vm76_vm1, %v5040_v21 }
  0xf0   :  { %4060 = vmatmul.mubr.msk.f32.gmra.mrb[2].mxu0 %vm76_vm1, %v5047_v22 }
  0xf1   :  { %4062 = vmatprep.mubr.msk.f32.mxu0 %vm76_vm1, %v5056_v23 }
  0xf4   :  { %4063 = vmatmul.mubr.msk.f32.gmra.mrb[4].mxu0 %vm76_vm1, %v5061_v24 }
  0xf5   :  { %4065 = vmatprep.mubr.msk.f32.mxu0 %vm76_vm1, %v5070_v25 }
  0xf8   :  { %4066 = vmatmul.mubr.msk.f32.gmra.mrb[6].mxu0 %vm76_vm1, %v5075_v26 }
  0xf9   :  { %4068 = vmatprep.mubr.msk.f32.mxu0 %vm76_vm1, %v5084_v27 }
  0xfc   :  { %4069 = vmatmul.mubr.msk.f32.gmra.mrb[8].mxu0 %vm76_vm1, %v5089_v28 }
  0xfd   :  { %4071 = vmatprep.mubr.msk.f32.mxu0 %vm76_vm1, %v5098_v29 }
 0x100   :  { %4072 = vmatmul.mubr.msk.f32.gmra.mrb[10].mxu0 %vm76_vm1, %v5103_v30 }
 0x101   :  { %4074 = vmatprep.mubr.msk.f32.mxu0 %vm76_vm1, %v5112_v31 }
 0x104   :  { %4075 = vmatmul.mubr.msk.f32.gmra.mrb[12].mxu0 %vm76_vm1, %v5117_v32 }
 0x105   :  { %4077 = vmatprep.mubr.msk.f32.mxu0 %vm76_vm1, %v5126_v33 }
 0x108   :  { %4078 = vmatmul.mubr.msk.f32.gmra.mrb[14].mxu0 %vm76_vm1, %v5131_v34 }
 0x109   :  { %4080 = vmatprep.mubr.msk.f32.mxu0 %vm76_vm1, %v5140_v35 }
 0x10c   :  { %4081 = vmatmul.mubr.msk.f32.gmra.mrb[16].mxu0 %vm76_vm1, %v5145_v36 }
 0x10d   :  { %4083 = vmatprep.mubr.msk.f32.mxu0 %vm76_vm1, %v5154_v37 }
 0x110   :  { %4084 = vmatmul.mubr.msk.f32.gmra.mrb[18].mxu0 %vm76_vm1, %v5159_v38  ;;  %v1702_v38 = vld [vmem:[%s6120_s3 + $0x10] sm:$0xff] }
 0x111   :  { %4086 = vmatprep.mubr.msk.f32.mxu0 %vm76_vm1, %v5168_v39  ;;  %v1703_v39 = vld [vmem:[%s6120_s3 + $0x18] sm:$0xff] }
 0x114   :  { %4087 = vmatmul.mubr.msk.f32.gmra.mrb[20].mxu0 %vm76_vm1, %v5173_v40 }
 0x115   :  { %4089 = vmatprep.mubr.msk.f32.mxu0 %vm76_vm1, %v5182_v41 }
 0x118   :  { %4090 = vmatmul.mubr.msk.f32.gmra.mrb[22].mxu0 %vm76_vm1, %v5187_v42 }
 0x119   :  { %4092 = vmatprep.mubr.msk.f32.mxu0 %vm76_vm1, %v5196_v43  ;;  %v4542_v43 = vpack.c.bf16 %v1703_v39, %v1702_v38  ;;  %v3382_v38 = vld [vmem:[%s6120_s3 + $0xc8] sm:$0xff] }
 0x11c   :  { %4093 = vmatmul.mubr.msk.f32.gmra.mrb[24].mxu0 %vm76_vm1, %v608_v57 }
 0x11d   :  { %4095 = vmatprep.mubr.msk.f32.mxu0 %vm76_vm1, %v961_v61 }
 0x120   :  { %4096 = vmatmul.mubr.msk.f32.gmra.mrb[26].mxu0 %vm76_vm1, %v1314_v62  ;;  %v1708_v62 = vld [vmem:[%s6120_s3 + $0x40] sm:$0xff] }
 0x121   :  { %v4554_v3 = vpack.c.bf16 %v1709_v63, %v1708_v62  ;;  %v3407_v62 = vld [vmem:[%s6120_s3 + $0x138] sm:$0xff]  ;;  %v3408_v63 = vld [vmem:[%s6120_s3 + $0x140] sm:$0xff] }
 0x1bf   :  { %v4058_v18 = vpop.f32.mrb[0].mxu0 }
 0x1c0   :  { %v1473_v19 = vpop.f32.mrb[1].mxu0 }
 0x1c1   :  { %v1647_v21 = vadd.f32 %v4058_v18, %v1473_v19 }
 0x1c3   :  { %v1648_v22 = vadd.f32 %v5515_v20, %v1647_v21  ;;  %v4061_v23 = vpop.f32.mrb[2].mxu0 }
 0x1c4   :  { %v1483_v24 = vpop.f32.mrb[3].mxu0 }
 0x1c5   :  { %1650 = vst.msk [vmem:[#allocation2] sm:$0xff] %vm1649_vm4, %v1648_v22  ;;  %v1651_v25 = vadd.f32 %v4061_v23, %v1483_v24 }
 0x1c7   :  { %v1652_v26 = vadd.f32 %v5515_v20, %v1651_v25  ;;  %v4064_v27 = vpop.f32.mrb[4].mxu0 }
 0x1c8   :  { %v1493_v28 = vpop.f32.mrb[5].mxu0 }
 0x1c9   :  { %1653 = vst.msk [vmem:[#allocation2 + $0x8] sm:$0xff] %vm1649_vm4, %v1652_v26  ;;  %v1654_v29 = vadd.f32 %v4064_v27, %v1493_v28 }
 0x1cb   :  { %v1655_v30 = vadd.f32 %v5515_v20, %v1654_v29  ;;  %v4067_v31 = vpop.f32.mrb[6].mxu0 }
 0x1cc   :  { %v1503_v32 = vpop.f32.mrb[7].mxu0 }
 0x1cd   :  { %1656 = vst.msk [vmem:[#allocation2 + $0x10] sm:$0xff] %vm1649_vm4, %v1655_v30  ;;  %v1657_v33 = vadd.f32 %v4067_v31, %v1503_v32 }
 0x1cf   :  { %v1658_v34 = vadd.f32 %v5515_v20, %v1657_v33  ;;  %v4070_v35 = vpop.f32.mrb[8].mxu0 }
 0x1d0   :  { %v1513_v36 = vpop.f32.mrb[9].mxu0  ;;  %v5524_v37 = vld [vmem:[#allocation2 + $0x8] sm:$0xff] }
 0x1d1   :  { %1659 = vst.msk [vmem:[#allocation2 + $0x18] sm:$0xff] %vm1649_vm4, %v1658_v34  ;;  %v1660_v40 = vadd.f32 %v4070_v35, %v1513_v36  ;;  %4120 = vmatprep.mubr.msk.f32.mxu1 %vm1649_vm4, %v5524_v37  ;;  %v3381_v36 = vld [vmem:[%s6120_s3 + $0xc0] sm:$0xff] }
 0x1d3   :  { %v1661_v41 = vadd.f32 %v5515_v20, %v1660_v40  ;;  %v4073_v42 = vpop.f32.mrb[10].mxu0  ;;  %v1690_v40 = vld [vmem:[#allocation2] sm:$0xff] }
 0x1d4   :  { %v1523_v44 = vpop.f32.mrb[11].mxu0  ;;  %v5536_v45 = vld [vmem:[#allocation2 + $0x10] sm:$0xff] }
 0x1d5   :  { %1662 = vst.msk [vmem:[#allocation2 + $0x20] sm:$0xff] %vm1649_vm4, %v1661_v41  ;;  %v1663_v48 = vadd.f32 %v4073_v42, %v1523_v44  ;;  %4121 = vmatmul.mubr.msk.f32.vlgmr.msra.gmra.mrb[0].mxu1 %vm1649_vm4, %v5536_v45  ;;  %v4562_v42 = vpack.c.bf16 %v3382_v38, %v3381_v36  ;;  %v3384_v44 = vld [vmem:[%s6120_s3 + $0xd8] sm:$0xff]  ;;  %v3454_v36 = vld [vmem:[%s6122_s5 + $0x90] sm:$0xff] }
 0x1d6   :  { %4541 = vmatpush3.bf16.msra.mxu1 %v4538_v17  ;;  %v4558_v17 = vpack.c.bf16 %v3380_v13, %v3379_v12  ;;  %v3455_v38 = vld [vmem:[%s6122_s5 + $0x98] sm:$0xff] }
 0x1d7   :  { %v1664_v49 = vadd.f32 %v5515_v20, %v1663_v48  ;;  %v4076_v50 = vpop.f32.mrb[12].mxu0  ;;  %4543 = vmatprep.subr.bf16.mxu1 %v4542_v43  ;;  %v3387_v48 = vld [vmem:[%s6120_s3 + $0xf0] sm:$0xff] }
 0x1d8   :  { %v1533_v52 = vpop.f32.mrb[13].mxu0  ;;  %v5548_v53 = vld [vmem:[#allocation2 + $0x18] sm:$0xff] }
 0x1d9   :  { %1665 = vst.msk [vmem:[#allocation2 + $0x28] sm:$0xff] %vm1649_vm4, %v1664_v49  ;;  %v1666_v56 = vadd.f32 %v4076_v50, %v1533_v52  ;;  %4123 = vmatprep.mubr.msk.f32.mxu1 %vm1649_vm4, %v5548_v53  ;;  %v3388_v49 = vld [vmem:[%s6120_s3 + $0xf8] sm:$0xff]  ;;  %v3401_v52 = vld [vmem:[%s6120_s3 + $0x108] sm:$0xff] }
 0x1da   :  { %4545 = vmatpush3.bf16.msra.mxu1 %v4542_v43  ;;  %v3383_v43 = vld [vmem:[%s6120_s3 + $0xd0] sm:$0xff]  ;;  %v4574_v50 = vpack.c.bf16 %v3388_v49, %v3387_v48 }
 0x1db   :  { %v1667_v57 = vadd.f32 %v5515_v20, %v1666_v56  ;;  %v4079_v58 = vpop.f32.mrb[14].mxu0  ;;  %4547 = vmatprep.subr.bf16.mxu1 %v4546_v51  ;;  %v3404_v56 = vld [vmem:[%s6120_s3 + $0x120] sm:$0xff] }
 0x1dc   :  { %v1543_v60 = vpop.f32.mrb[15].mxu0  ;;  %v5560_v61 = vld [vmem:[#allocation2 + $0x20] sm:$0xff] }
 0x1dd   :  { %1668 = vst.msk [vmem:[#allocation2 + $0x30] sm:$0xff] %vm1649_vm4, %v1667_v57  ;;  %v1669_v0 = vadd.f32 %v4079_v58, %v1543_v60  ;;  %4124 = vmatmul.mubr.msk.f32.gmra.mrb[2].mxu1 %vm1649_vm4, %v5560_v61  ;;  %v4578_v57 = vpack.c.bf16 %v3402_v54, %v3401_v52  ;;  %v4582_v58 = vpack.c.bf16 %v3404_v56, %v3403_v55  ;;  %v2557_v55 = vld [vmem:[%s6122_s5] sm:$0xff]  ;;  %v2558_v56 = vld [vmem:[%s6122_s5 + $0x8] sm:$0xff] }
 0x1de   :  { %4549 = vmatpush3.bf16.msra.mxu1 %v4546_v51  ;;  %v3389_v51 = vld [vmem:[%s6120_s3 + $0x100] sm:$0xf] }
 0x1df   :  { %v1670_v1 = vadd.f32 %v5515_v20, %v1669_v0  ;;  %v4082_v2 = vpop.f32.mrb[16].mxu0  ;;  %4551 = vmatprep.subr.bf16.mxu1 %v4550_v59  ;;  %v4590_v0 = vpack.c.bf16 %v3408_v63, %v3407_v62  ;;  %v2559_v62 = vld [vmem:[%s6122_s5 + $0x10] sm:$0xff]  ;;  %v2560_v63 = vld [vmem:[%s6122_s5 + $0x18] sm:$0xff] }
 0x1e0   :  { %v1553_v4 = vpop.f32.mrb[17].mxu0  ;;  %v5572_v5 = vld [vmem:[#allocation2 + $0x28] sm:$0xff] }
 0x1e1   :  { %1671 = vst.msk [vmem:[#allocation2 + $0x38] sm:$0xff] %vm1649_vm4, %v1670_v1  ;;  %v1672_v6 = vadd.f32 %v4082_v2, %v1553_v4  ;;  %4126 = vmatprep.mubr.msk.f32.mxu1 %vm1649_vm4, %v5572_v5  ;;  %v3409_v1 = vld [vmem:[%s6120_s3 + $0x148] sm:$0xff]  ;;  %v3410_v2 = vld [vmem:[%s6120_s3 + $0x150] sm:$0xff]  ;;  %v3411_v4 = vld [vmem:[%s6120_s3 + $0x158] sm:$0xf] }
 0x1e2   :  { %4553 = vmatpush3.bf16.msra.mxu1 %v4550_v59  ;;  %v3405_v59 = vld [vmem:[%s6120_s3 + $0x128] sm:$0xff] }
 0x1e3   :  { %v1673_v7 = vadd.f32 %v5515_v20, %v1672_v6  ;;  %v4085_v8 = vpop.f32.mrb[18].mxu0  ;;  %4555 = vmatprep.subr.bf16.mxu1 %v4554_v3 }
 0x1e4   :  { %v1563_v10 = vpop.f32.mrb[19].mxu0  ;;  %v5581_v11 = vld [vmem:[#allocation2 + $0x30] sm:$0xff] }
 0x1e5   :  { %1674 = vst.msk [vmem:[#allocation2 + $0x40] sm:$0xff] %vm1649_vm4, %v1673_v7  ;;  %v1675_v14 = vadd.f32 %v4085_v8, %v1563_v10  ;;  %4127 = vmatmul.mubr.msk.f32.gmra.mrb[4].mxu1 %vm1649_vm4, %v5581_v11  ;;  %v3423_v7 = vld [vmem:[%s6120_s3 + $0x160] sm:$0xff]  ;;  %v3424_v8 = vld [vmem:[%s6120_s3 + $0x168] sm:$0xff]  ;;  %v3426_v10 = vld [vmem:[%s6120_s3 + $0x178] sm:$0xff] }
 0x1e6   :  { %4557 = vmatpush3.bf16.msra.mxu1 %v4554_v3  ;;  %v4594_v3 = vpack.c.bf16 %v3410_v2, %v3409_v1  ;;  %v4598_v12 = vpack.c.bf16 %v3424_v8, %v3423_v7  ;;  %v2562_v7 = vld [vmem:[%s6122_s5 + $0x28] sm:$0xff] }
 0x1e7   :  { %v1676_v15 = vadd.f32 %v5515_v20, %v1675_v14  ;;  %v4088_v16 = vpop.f32.mrb[20].mxu0  ;;  %4155 = vmatprep.subr.msk.mxu1 %vm161_vm0, %v1710_v9  ;;  %v3427_v14 = vld [vmem:[%s6120_s3 + $0x180] sm:$0xff] }
 0x1e8   :  { %v1573_v18 = vpop.f32.mrb[21].mxu0  ;;  %v5594_v19 = vld [vmem:[#allocation2 + $0x38] sm:$0xff] }
 0x1e9   :  { %1677 = vst.msk [vmem:[#allocation2 + $0x48] sm:$0xff] %vm1649_vm4, %v1676_v15  ;;  %v1678_v21 = vadd.f32 %v4088_v16, %v1573_v18  ;;  %4129 = vmatprep.mubr.msk.f32.mxu1 %vm1649_vm4, %v5594_v19  ;;  %v3429_v16 = vld [vmem:[%s6120_s3 + $0x190] sm:$0xff] }
 0x1ea   :  { %4156 = vmatpush3.msk.msra.mxu1 %vm161_vm0, %v1710_v9  ;;  %v3425_v9 = vld [vmem:[%s6120_s3 + $0x170] sm:$0xff] }
 0x1eb   :  { %v1679_v22 = vadd.f32 %v5515_v20, %v1678_v21  ;;  %v4091_v23 = vpop.f32.mrb[22].mxu0  ;;  %4559 = vmatprep.subr.bf16.mxu1 %v4558_v17  ;;  %v4602_v13 = vpack.c.bf16 %v3426_v10, %v3425_v9  ;;  %v3431_v21 = vld [vmem:[%s6120_s3 + $0x1a0] sm:$0xff]  ;;  %v2563_v9 = vld [vmem:[%s6122_s5 + $0x30] sm:$0xff]  ;;  %v2564_v10 = vld [vmem:[%s6122_s5 + $0x38] sm:$0xff] }
 0x1ec   :  { %v1583_v24 = vpop.f32.mrb[23].mxu0  ;;  %v5601_v25 = vld [vmem:[#allocation2 + $0x40] sm:$0xff] }
 0x1ed   :  { %1680 = vst.msk [vmem:[#allocation2 + $0x50] sm:$0xff] %vm1649_vm4, %v1679_v22  ;;  %v1681_v26 = vadd.f32 %v4091_v23, %v1583_v24  ;;  %4130 = vmatmul.mubr.msk.f32.gmra.mrb[6].mxu1 %vm1649_vm4, %v5601_v25  ;;  %v3432_v22 = vld [vmem:[%s6120_s3 + $0x1a8] sm:$0xff] }
 0x1ee   :  { %v4614_v23 = vpack.c.bf16 %v3432_v22, %v3431_v21  ;;  %v3461_v21 = vld [vmem:[%s6122_s5 + $0xb8] sm:$0xff] }
 0x1ef   :  { %v1682_v27 = vadd.f32 %v5515_v20, %v1681_v26  ;;  %v4094_v28 = vpop.f32.mrb[24].mxu0  ;;  %v3433_v26 = vld [vmem:[%s6120_s3 + $0x1b0] sm:$0xf] }
 0x1f0   :  { %v1593_v29 = vpop.f32.mrb[25].mxu0  ;;  %v5607_v30 = vld [vmem:[#allocation2 + $0x48] sm:$0xff] }
 0x1f1   :  { %1683 = vst.msk [vmem:[#allocation2 + $0x58] sm:$0xff] %vm1649_vm4, %v1682_v27  ;;  %v1684_v31 = vadd.f32 %v4094_v28, %v1593_v29  ;;  %4132 = vmatprep.mubr.msk.f32.mxu1 %vm1649_vm4, %v5607_v30  ;;  %v3446_v27 = vld [vmem:[%s6122_s5 + $0x50] sm:$0xff]  ;;  %v3447_v28 = vld [vmem:[%s6122_s5 + $0x58] sm:$0xff] }
 0x1f2   :  { %v4619_v29 = vpack.c.bf16 %v3447_v28, %v3446_v27  ;;  %v3464_v28 = vld [vmem:[%s6122_s5 + $0xd0] sm:$0xff] }
 0x1f3   :  { %v1685_v32 = vadd.f32 %v5515_v20, %v1684_v31  ;;  %v4097_v33 = vpop.f32.mrb[26].mxu0  ;;  %v4898_v31 = vmov 0.0|0.0  }
 0x1f4   :  { %v1603_v34 = vpop.f32.mrb[27].mxu0  ;;  %v5613_v35 = vld [vmem:[#allocation2 + $0x50] sm:$0xff] }
 0x1f5   :  { %1686 = vst.msk [vmem:[#allocation2 + $0x60] sm:$0xff] %vm1649_vm4, %v1685_v32  ;;  %v1687_v39 = vadd.f32 %v4097_v33, %v1603_v34  ;;  %4133 = vmatmul.mubr.msk.f32.gmra.mrb[8].mxu1 %vm1649_vm4, %v5613_v35  ;;  %v3452_v33 = vld [vmem:[%s6122_s5 + $0x80] sm:$0xff]  ;;  %v3453_v34 = vld [vmem:[%s6122_s5 + $0x88] sm:$0xff] }
 0x1f6   :  { %4157 = vmatprep.mubr.msk.f32.mxu1 %vm1649_vm4, %v1690_v40  ;;  %v4900_v40 = vmov 0.0  }
 0x1f7   :  { %v1688_v41 = vadd.f32 %v5515_v20, %v1687_v39  ;;  %v4566_v20 = vpack.c.bf16 %v3384_v44, %v3383_v43  ;;  %v4631_v39 = vpack.c.bf16 %v3455_v38, %v3454_v36  ;;  %v3445_v43 = vld [vmem:[%s6123_s4] ss:$0 sm:$0xff]  ;;  %v3473_v38 = vld [vmem:[%s6122_s5 + $0x110] sm:$0xff] }
 0x1f8   :  { %v2002_v6 = vld [vmem:[#allocation2 + $0x58] sm:$0xff] }
 0x1f9   :  { %1689 = vst.msk [vmem:[#allocation2 + $0x68] sm:$0xff] %vm1649_vm4, %v1688_v41  ;;  %4158 = vmatmul.mubr.msk.f32.vlgmr.msra.gmra.mrb[0].mxu1 %vm1649_vm4, %v5524_v37  ;;  %v4570_v37 = vpack.c.bf16 %v3386_v47, %v3385_v46 }
 0x1fa   :  { %4561 = vmatpush3.bf16.msra.mxu1 %v4558_v17  ;;  %4160 = vmatprep.mubr.msk.f32.mxu1 %vm1649_vm4, %v5536_v45  ;;  %v3430_v17 = vld [vmem:[%s6120_s3 + $0x198] sm:$0xff] }
 0x1fb   :  { %4563 = vmatprep.subr.bf16.mxu1 %v4562_v42  ;;  %v4610_v18 = vpack.c.bf16 %v3430_v17, %v3429_v16  ;;  %v3459_v16 = vld [vmem:[%s6122_s5 + $0xa8] sm:$0xff] }
 0x1fc   :  { %v2182_v24 = vld [vmem:[#allocation2 + $0x60] sm:$0xff] }
 0x1fd   :  { %4161 = vmatmul.mubr.msk.f32.gmra.mrb[2].mxu1 %vm1649_vm4, %v5548_v53 }
 0x1fe   :  { %4565 = vmatpush3.bf16.msra.mxu1 %v4562_v42  ;;  %4163 = vmatprep.mubr.msk.f32.mxu1 %vm1649_vm4, %v5560_v61 }
 0x1ff   :  { %4567 = vmatprep.subr.bf16.mxu1 %v4566_v20 }
 0x201   :  { %4164 = vmatmul.mubr.msk.f32.gmra.mrb[4].mxu1 %vm1649_vm4, %v5572_v5 }
 0x202   :  { %4569 = vmatpush3.bf16.msra.mxu1 %v4566_v20  ;;  %4166 = vmatprep.mubr.msk.f32.mxu1 %vm1649_vm4, %v5581_v11 }
 0x203   :  { %4571 = vmatprep.subr.bf16.mxu1 %v4570_v37 }
 0x205   :  { %4167 = vmatmul.mubr.msk.f32.gmra.mrb[6].mxu1 %vm1649_vm4, %v5594_v19 }
 0x206   :  { %4573 = vmatpush3.bf16.msra.mxu1 %v4570_v37  ;;  %4169 = vmatprep.mubr.msk.f32.mxu1 %vm1649_vm4, %v5601_v25 }
 0x207   :  { %4575 = vmatprep.subr.bf16.mxu1 %v4574_v50 }
 0x209   :  { %4170 = vmatmul.mubr.msk.f32.gmra.mrb[8].mxu1 %vm1649_vm4, %v5607_v30 }
 0x20a   :  { %4577 = vmatpush3.bf16.msra.mxu1 %v4574_v50  ;;  %4194 = vmatprep.mubr.msk.f32.mxu1 %vm1649_vm4, %v5536_v45  ;;  %v3406_v45 = vld [vmem:[%s6120_s3 + $0x130] sm:$0xff] }
 0x20b   :  { %4192 = vmatprep.subr.msk.mxu1 %vm161_vm0, %v3389_v51  ;;  %v4586_v60 = vpack.c.bf16 %v3406_v45, %v3405_v59  ;;  %v4634_v59 = vpack.c.bf16 %v2558_v56, %v2557_v55  ;;  %v3484_v55 = vld [vmem:[%s6122_s5 + $0x160] sm:$0xff]  ;;  %v3485_v56 = vld [vmem:[%s6122_s5 + $0x168] sm:$0xff] }
 0x20e   :  { %4193 = vmatpush3.msk.msra.mxu1 %vm161_vm0, %v3389_v51 }
 0x20f   :  { %4195 = vmatmul.mubr.msk.f32.vlgmr.msra.gmra.mrb[0].mxu1 %vm1649_vm4, %v5548_v53  ;;  %4579 = vmatprep.subr.bf16.mxu1 %v4578_v57 }
 0x210   :  { %4197 = vmatprep.mubr.msk.f32.mxu1 %vm1649_vm4, %v5560_v61  ;;  %4581 = vmatpush3.bf16.msra.mxu1 %v4578_v57 }
 0x211   :  { %4583 = vmatprep.subr.bf16.mxu1 %v4582_v58 }
 0x213   :  { %4198 = vmatmul.mubr.msk.f32.gmra.mrb[2].mxu1 %vm1649_vm4, %v5572_v5 }
 0x214   :  { %4200 = vmatprep.mubr.msk.f32.mxu1 %vm1649_vm4, %v5581_v11  ;;  %4585 = vmatpush3.bf16.msra.mxu1 %v4582_v58 }
 0x215   :  { %4587 = vmatprep.subr.bf16.mxu1 %v4586_v60 }
 0x217   :  { %4201 = vmatmul.mubr.msk.f32.gmra.mrb[4].mxu1 %vm1649_vm4, %v5594_v19 }
 0x218   :  { %4203 = vmatprep.mubr.msk.f32.mxu1 %vm1649_vm4, %v5601_v25  ;;  %4589 = vmatpush3.bf16.msra.mxu1 %v4586_v60 }
 0x219   :  { %4591 = vmatprep.subr.bf16.mxu1 %v4590_v0 }
 0x21b   :  { %4204 = vmatmul.mubr.msk.f32.gmra.mrb[6].mxu1 %vm1649_vm4, %v5607_v30 }
 0x21c   :  { %4206 = vmatprep.mubr.msk.f32.mxu1 %vm1649_vm4, %v5613_v35  ;;  %4593 = vmatpush3.bf16.msra.mxu1 %v4590_v0 }
 0x21d   :  { %4595 = vmatprep.subr.bf16.mxu1 %v4594_v3 }
 0x21f   :  { %4207 = vmatmul.mubr.msk.f32.gmra.mrb[8].mxu1 %vm1649_vm4, %v2002_v6 }
 0x220   :  { %4597 = vmatpush3.bf16.msra.mxu1 %v4594_v3  ;;  %4231 = vmatprep.mubr.msk.f32.mxu1 %vm1649_vm4, %v5548_v53  ;;  %v3428_v53 = vld [vmem:[%s6120_s3 + $0x188] sm:$0xff]  ;;  %v4637_v3 = vpack.c.bf16 %v2560_v63, %v2559_v62 }
 0x221   :  { %4229 = vmatprep.subr.msk.mxu1 %vm161_vm0, %v3411_v4  ;;  %v4606_v15 = vpack.c.bf16 %v3428_v53, %v3427_v14  ;;  %v2566_v14 = vld [vmem:[%s6122_s5 + $0x48] sm:$0xff] }
 0x222   :  { %v3489_v62 = vld [vmem:[%s6122_s5 + $0x188] sm:$0xff] }
 0x224   :  { %4230 = vmatpush3.msk.msra.mxu1 %vm161_vm0, %v3411_v4 }
 0x225   :  { %4232 = vmatmul.mubr.msk.f32.vlgmr.msra.gmra.mrb[0].mxu1 %vm1649_vm4, %v5560_v61  ;;  %4599 = vmatprep.subr.bf16.mxu1 %v4598_v12 }
 0x226   :  { %4234 = vmatprep.mubr.msk.f32.mxu1 %vm1649_vm4, %v5572_v5  ;;  %4601 = vmatpush3.bf16.msra.mxu1 %v4598_v12  ;;  %v4643_v12 = vpack.c.bf16 %v2564_v10, %v2563_v9  ;;  %v2997_v9 = vld [vmem:[%s6124_s7 + $0x28] sm:$0xff]  ;;  %v2998_v10 = vld [vmem:[%s6124_s7 + $0x30] sm:$0xff] }
 0x227   :  { %4603 = vmatprep.subr.bf16.mxu1 %v4602_v13 }
 0x229   :  { %4235 = vmatmul.mubr.msk.f32.gmra.mrb[2].mxu1 %vm1649_vm4, %v5581_v11 }
 0x22a   :  { %4237 = vmatprep.mubr.msk.f32.mxu1 %vm1649_vm4, %v5594_v19  ;;  %4605 = vmatpush3.bf16.msra.mxu1 %v4602_v13  ;;  %v2565_v13 = vld [vmem:[%s6122_s5 + $0x40] sm:$0xff] }
 0x22b   :  { %4607 = vmatprep.subr.bf16.mxu1 %v4606_v15  ;;  %v4646_v53 = vpack.c.bf16 %v2566_v14, %v2565_v13  ;;  %v2999_v13 = vld [vmem:[%s6124_s7 + $0x38] sm:$0xff] }
 0x22c   :  { %v4703_v14 = vpack.c.bf16 %v2999_v13, %v2998_v10 }
 0x22d   :  { %4238 = vmatmul.mubr.msk.f32.gmra.mrb[4].mxu1 %vm1649_vm4, %v5601_v25 }
 0x22e   :  { %4240 = vmatprep.mubr.msk.f32.mxu1 %vm1649_vm4, %v5607_v30  ;;  %4609 = vmatpush3.bf16.msra.mxu1 %v4606_v15  ;;  %v3458_v15 = vld [vmem:[%s6122_s5 + $0xa0] sm:$0xff] }
 0x22f   :  { %4611 = vmatprep.subr.bf16.mxu1 %v4610_v18  ;;  %v4649_v17 = vpack.c.bf16 %v3459_v16, %v3458_v15  ;;  %v3001_v15 = vld [vmem:[%s6124_s7 + $0x48] sm:$0xff] }
 0x231   :  { %4241 = vmatmul.mubr.msk.f32.gmra.mrb[6].mxu1 %vm1649_vm4, %v5613_v35 }
 0x232   :  { %4243 = vmatprep.mubr.msk.f32.mxu1 %vm1649_vm4, %v2002_v6  ;;  %4613 = vmatpush3.bf16.msra.mxu1 %v4610_v18  ;;  %v3460_v18 = vld [vmem:[%s6122_s5 + $0xb0] sm:$0xff] }
 0x233   :  { %4615 = vmatprep.subr.bf16.mxu1 %v4614_v23 }
 0x235   :  { %4244 = vmatmul.mubr.msk.f32.gmra.mrb[8].mxu1 %vm1649_vm4, %v2182_v24 }
 0x236   :  { %4617 = vmatpush3.bf16.msra.mxu1 %v4614_v23  ;;  %4268 = vmatprep.mubr.msk.f32.mxu1 %vm1649_vm4, %v5560_v61  ;;  %v2362_v61 = vld [vmem:[#allocation2 + $0x68] sm:$0xff]  ;;  %v4652_v23 = vpack.c.bf16 %v3461_v21, %v3460_v18  ;;  %v3003_v18 = vld [vmem:[%s6124_s7 + $0x58] sm:$0xff] }
 0x237   :  { %4266 = vmatprep.subr.msk.mxu1 %vm161_vm0, %v3433_v26 }
 0x23a   :  { %4267 = vmatpush3.msk.msra.mxu1 %vm161_vm0, %v3433_v26  ;;  %v3463_v26 = vld [vmem:[%s6122_s5 + $0xc8] sm:$0xff] }
 0x23b   :  { %4269 = vmatmul.mubr.msk.f32.vlgmr.msra.gmra.mrb[0].mxu1 %vm1649_vm4, %v5572_v5  ;;  %4618 = vmatprep.subr.bf16.mxu1 %v4898_v31  ;;  %v3448_v5 = vld [vmem:[%s6122_s5 + $0x60] sm:$0xff] }
 0x23c   :  { %4271 = vmatprep.mubr.msk.f32.mxu1 %vm1649_vm4, %v5581_v11  ;;  %4620 = vmatpush3.bf16.msra.mxu1 %v4619_v29  ;;  %v3449_v11 = vld [vmem:[%s6122_s5 + $0x68] sm:$0xff]  ;;  %v3465_v29 = vld [vmem:[%s6122_s5 + $0xd8] sm:$0xff] }
 0x23d   :  { %4621 = vmatprep.subr.bf16.mxu1 %v4898_v31 }
 0x23f   :  { %4272 = vmatmul.mubr.msk.f32.gmra.mrb[2].mxu1 %vm1649_vm4, %v5594_v19  ;;  %v4622_v19 = vpack.c.bf16 %v3449_v11, %v3448_v5  ;;  %v3466_v5 = vld [vmem:[%s6122_s5 + $0xe0] sm:$0xff]  ;;  %v3467_v11 = vld [vmem:[%s6122_s5 + $0xe8] sm:$0xff] }
 0x240   :  { %4274 = vmatprep.mubr.msk.f32.mxu1 %vm1649_vm4, %v5601_v25  ;;  %v3450_v25 = vld [vmem:[%s6122_s5 + $0x70] sm:$0xff] }
 0x241   :  { %4623 = vmatpush3.bf16.msra.mxu1 %v4622_v19  ;;  %v4661_v19 = vpack.c.bf16 %v3467_v11, %v3466_v5 }
 0x242   :  { %4624 = vmatprep.subr.bf16.mxu1 %v4898_v31 }
 0x243   :  { %4275 = vmatmul.mubr.msk.f32.gmra.mrb[4].mxu1 %vm1649_vm4, %v5607_v30  ;;  %v3451_v30 = vld [vmem:[%s6122_s5 + $0x78] sm:$0xff] }
 0x244   :  { %4277 = vmatprep.mubr.msk.f32.mxu1 %vm1649_vm4, %v5613_v35  ;;  %v4625_v32 = vpack.c.bf16 %v3451_v30, %v3450_v25  ;;  %v4628_v35 = vpack.c.bf16 %v3453_v34, %v3452_v33  ;;  %v3469_v25 = vld [vmem:[%s6122_s5 + $0xf0] sm:$0xff]  ;;  %v3470_v30 = vld [vmem:[%s6122_s5 + $0xf8] sm:$0xff]  ;;  %v3471_v33 = vld [vmem:[%s6122_s5 + $0x100] sm:$0xff] }
 0x245   :  { %v3472_v34 = vld [vmem:[%s6122_s5 + $0x108] sm:$0xff] }
 0x246   :  { %4626 = vmatpush3.bf16.msra.mxu1 %v4625_v32  ;;  %v4664_v32 = vpack.c.bf16 %v3470_v30, %v3469_v25  ;;  %v4667_v36 = vpack.c.bf16 %v3472_v34, %v3471_v33 }
 0x247   :  { %4278 = vmatmul.mubr.msk.f32.gmra.mrb[6].mxu1 %vm1649_vm4, %v2002_v6  ;;  %4627 = vmatprep.subr.bf16.mxu1 %v4898_v31  ;;  %v2561_v6 = vld [vmem:[%s6122_s5 + $0x20] sm:$0xff] }
 0x248   :  { %4280 = vmatprep.mubr.msk.f32.mxu1 %vm1649_vm4, %v2182_v24  ;;  %v4640_v8 = vpack.c.bf16 %v2562_v7, %v2561_v6  ;;  %v3462_v24 = vld [vmem:[%s6122_s5 + $0xc0] sm:$0xff]  ;;  %v2995_v6 = vld [vmem:[%s6124_s7 + $0x18] sm:$0xff] }
 0x249   :  { %v4655_v27 = vpack.c.bf16 %v3463_v26, %v3462_v24  ;;  %v3006_v26 = vld [vmem:[%s6124_s7 + $0x70] sm:$0xff] }
 0x24a   :  { %4629 = vmatpush3.bf16.msra.mxu1 %v4628_v35 }
 0x24b   :  { %4281 = vmatmul.mubr.msk.f32.gmra.mrb[8].mxu1 %vm1649_vm4, %v2362_v61  ;;  %4630 = vmatprep.subr.bf16.mxu1 %v4898_v31  ;;  %v4658_v61 = vpack.c.bf16 %v3465_v29, %v3464_v28 }
 0x24c   :  { %4303 = vmatprep.mubr.msk.f32.mxu1 %vm4899_vm5, %v4900_v40 }
 0x24e   :  { %4632 = vmatpush3.bf16.msra.mxu1 %v4631_v39  ;;  %v3474_v39 = vld [vmem:[%s6122_s5 + $0x118] sm:$0xff] }
 0x24f   :  { %4633 = vmatprep.subr.bf16.mxu1 %v4898_v31 }
 0x30e   :  { %v4270_v41 = vpop.f32.mrb[0].mxu1 }
 0x30f   :  { %v2474_v42 = vpop.f32.mrb[1].mxu1 }
 0x310   :  { %v2540_v44 = vadd.f32 %v4270_v41, %v2474_v42  ;;  %v4670_v41 = vpack.c.bf16 %v3474_v39, %v3473_v38  ;;  %v3475_v42 = vld [vmem:[%s6122_s5 + $0x120] sm:$0xff] }
 0x311   :  { %v3491_v38 = vld [vmem:[%s6125_s6] ss:$0 sm:$0xff] }
 0x312   :  { %v2541_v20 = vadd.f32 %v3445_v43, %v2540_v44  ;;  %v4273_v46 = vpop.f32.mrb[2].mxu1 }
 0x313   :  { %v2484_v47 = vpop.f32.mrb[3].mxu1 }
 0x314   :  { %2543 = vst.msk [vmem:[#allocation3] sm:$0xff] %vm2542_vm6, %v2541_v20  ;;  %v2544_v37 = vadd.f32 %v4273_v46, %v2484_v47  ;;  %v3477_v20 = vld [vmem:[%s6122_s5 + $0x130] sm:$0xff]  ;;  %v3478_v46 = vld [vmem:[%s6122_s5 + $0x138] sm:$0xff] }
 0x315   :  { %v4676_v47 = vpack.c.bf16 %v3478_v46, %v3477_v20 }
 0x316   :  { %v2545_v48 = vadd.f32 %v3445_v43, %v2544_v37  ;;  %v4276_v49 = vpop.f32.mrb[4].mxu1  ;;  %v3480_v37 = vld [vmem:[%s6122_s5 + $0x140] sm:$0xff] }
 0x317   :  { %v2494_v50 = vpop.f32.mrb[5].mxu1 }
 0x318   :  { %2546 = vst.msk [vmem:[#allocation3 + $0x8] sm:$0xff] %vm2542_vm6, %v2545_v48  ;;  %v2547_v51 = vadd.f32 %v4276_v49, %v2494_v50  ;;  %v3481_v48 = vld [vmem:[%s6122_s5 + $0x148] sm:$0xff]  ;;  %v3482_v50 = vld [vmem:[%s6122_s5 + $0x150] sm:$0xff] }
 0x319   :  { %v4679_v49 = vpack.c.bf16 %v3481_v48, %v3480_v37  ;;  %v3089_v37 = vld [vmem:[%s6126_s9 + $0x18] sm:$0xff] }
 0x31a   :  { %v2548_v52 = vadd.f32 %v3445_v43, %v2547_v51  ;;  %v4279_v54 = vpop.f32.mrb[6].mxu1  ;;  %v3483_v51 = vld [vmem:[%s6122_s5 + $0x158] sm:$0xff] }
 0x31b   :  { %v2504_v57 = vpop.f32.mrb[7].mxu1  ;;  %v2556_v22 = vld [vmem:[#allocation3] sm:$0xff] }
 0x31c   :  { %2549 = vst.msk [vmem:[#allocation3 + $0x10] sm:$0xff] %vm2542_vm6, %v2548_v52  ;;  %v2550_v58 = vadd.f32 %v4279_v54, %v2504_v57  ;;  %v4682_v54 = vpack.c.bf16 %v3483_v51, %v3482_v50  ;;  %v4685_v57 = vpack.c.bf16 %v3485_v56, %v3484_v55  ;;  %v3091_v50 = vld [vmem:[%s6126_s9 + $0x28] sm:$0xff]  ;;  %v3094_v55 = vld [vmem:[%s6126_s9 + $0x40] sm:$0xff] }
 0x31d   :  { %v3095_v56 = vld [vmem:[%s6126_s9 + $0x48] sm:$0xff] }
 0x31e   :  { %v2551_v45 = vadd.f32 %v3445_v43, %v2550_v58  ;;  %v4282_v60 = vpop.f32.mrb[8].mxu1  ;;  %v3486_v58 = vld [vmem:[%s6122_s5 + $0x170] sm:$0xff] }
 0x31f   :  { %v2514_v0 = vpop.f32.mrb[9].mxu1  ;;  %v2567_v1 = vld [vmem:[#allocation3 + $0x8] sm:$0xff] }
 0x320   :  { %2552 = vst.msk [vmem:[#allocation3 + $0x18] sm:$0xff] %vm2542_vm6, %v2551_v45  ;;  %v2553_v2 = vadd.f32 %v4282_v60, %v2514_v0  ;;  %4304 = vmatmul.mubr.msk.f32.vlgmr.msra.gmra.mrb[10].mxu1 %vm2542_vm6, %v2567_v1  ;;  %v3488_v60 = vld [vmem:[%s6122_s5 + $0x180] sm:$0xff] }
 0x321   :  { %4635 = vmatpush3.bf16.msra.mxu1 %v4634_v59  ;;  %4326 = vmatprep.mubr.msk.f32.mxu1 %vm4899_vm5, %v4900_v40  ;;  %v3487_v59 = vld [vmem:[%s6122_s5 + $0x178] sm:$0xff]  ;;  %v4691_v63 = vpack.c.bf16 %v3489_v62, %v3488_v60  ;;  %v2992_v1 = vld [vmem:[%s6124_s7] sm:$0xff]  ;;  %v3099_v62 = vld [vmem:[%s6126_s9 + $0x68] sm:$0xff] }
 0x322   :  { %v2554_v4 = vadd.f32 %v3445_v43, %v2553_v2  ;;  %4636 = vmatprep.subr.bf16.mxu1 %v4898_v31  ;;  %v3476_v43 = vld [vmem:[%s6122_s5 + $0x128] sm:$0xff]  ;;  %v4688_v45 = vpack.c.bf16 %v3487_v59, %v3486_v58  ;;  %v3096_v58 = vld [vmem:[%s6126_s9 + $0x50] sm:$0xff]  ;;  %v3097_v59 = vld [vmem:[%s6126_s9 + $0x58] sm:$0xff] }
 0x323   :  { %v2725_v35 = vld [vmem:[#allocation3 + $0x10] sm:$0xff]  ;;  %v4673_v44 = vpack.c.bf16 %v3476_v43, %v3475_v42  ;;  %v2993_v2 = vld [vmem:[%s6124_s7 + $0x8] sm:$0xff] }
 0x324   :  { %2555 = vst.msk [vmem:[#allocation3 + $0x20] sm:$0xff] %vm2542_vm6, %v2554_v4  ;;  %v2994_v4 = vld [vmem:[%s6124_s7 + $0x10] sm:$0xff]  ;;  %v3086_v42 = vld [vmem:[%s6126_s9] sm:$0xff]  ;;  %v3087_v43 = vld [vmem:[%s6126_s9 + $0x8] sm:$0xff] }
 0x325   :  { %4638 = vmatpush3.bf16.msra.mxu1 %v4637_v3  ;;  %v4694_v3 = vpack.c.bf16 %v2993_v2, %v2992_v1  ;;  %v4697_v7 = vpack.c.bf16 %v2995_v6, %v2994_v4  ;;  %v4718_v20 = vpack.c.bf16 %v3087_v43, %v3086_v42  ;;  %v3098_v60 = vld [vmem:[%s6126_s9 + $0x60] sm:$0xff]  ;;  %v3101_v1 = vld [vmem:[%s6126_s9 + $0x78] sm:$0xff] }
 0x326   :  { %4639 = vmatprep.subr.bf16.mxu1 %v4898_v31 }
 0x327   :  { %v2811_v52 = vld [vmem:[#allocation3 + $0x18] sm:$0xff] }
 0x329   :  { %4641 = vmatpush3.bf16.msra.mxu1 %v4640_v8  ;;  %v2996_v8 = vld [vmem:[%s6124_s7 + $0x20] sm:$0xff] }
 0x32a   :  { %4642 = vmatprep.subr.bf16.mxu1 %v4898_v31 }
 0x32b   :  { %v2897_v0 = vld [vmem:[#allocation3 + $0x20] sm:$0xff] }
 0x32d   :  { %4644 = vmatpush3.bf16.msra.mxu1 %v4643_v12  ;;  %v4700_v12 = vpack.c.bf16 %v2997_v9, %v2996_v8 }
 0x32e   :  { %4645 = vmatprep.subr.bf16.mxu1 %v4898_v31 }
 0x331   :  { %4647 = vmatpush3.bf16.msra.mxu1 %v4646_v53  ;;  %v3000_v53 = vld [vmem:[%s6124_s7 + $0x40] sm:$0xff] }
 0x332   :  { %4648 = vmatprep.subr.bf16.mxu1 %v4898_v31  ;;  %v4706_v16 = vpack.c.bf16 %v3001_v15, %v3000_v53 }
 0x334   :  { %4327 = vmatmul.mubr.msk.f32.vlgmr.msra.gmra.mrb[12].mxu1 %vm2542_vm6, %v2556_v22  ;;  %v3004_v22 = vld [vmem:[%s6124_s7 + $0x60] sm:$0xff] }
 0x335   :  { %4650 = vmatpush3.bf16.msra.mxu1 %v4649_v17  ;;  %4349 = vmatprep.mubr.msk.f32.mxu1 %vm4899_vm5, %v4900_v40  ;;  %v3002_v17 = vld [vmem:[%s6124_s7 + $0x50] sm:$0xff] }
 0x336   :  { %4651 = vmatprep.subr.bf16.mxu1 %v4898_v31  ;;  %v4709_v21 = vpack.c.bf16 %v3003_v18, %v3002_v17 }
 0x339   :  { %4653 = vmatpush3.bf16.msra.mxu1 %v4652_v23  ;;  %v3005_v23 = vld [vmem:[%s6124_s7 + $0x68] sm:$0xff] }
 0x33a   :  { %4654 = vmatprep.subr.bf16.mxu1 %v4898_v31  ;;  %v4712_v24 = vpack.c.bf16 %v3005_v23, %v3004_v22 }
 0x33d   :  { %4656 = vmatpush3.bf16.msra.mxu1 %v4655_v27  ;;  %v3007_v27 = vld [vmem:[%s6124_s7 + $0x78] sm:$0xff] }
 0x33e   :  { %4657 = vmatprep.subr.bf16.mxu1 %v4898_v31  ;;  %v4715_v28 = vpack.c.bf16 %v3007_v27, %v3006_v26 }
 0x341   :  { %4659 = vmatpush3.bf16.msra.mxu1 %v4658_v61 }
 0x342   :  { %4660 = vmatprep.subr.bf16.mxu1 %v4898_v31 }
 0x345   :  { %4662 = vmatpush3.bf16.msra.mxu1 %v4661_v19 }
 0x346   :  { %4663 = vmatprep.subr.bf16.mxu1 %v4898_v31 }
 0x348   :  { %4350 = vmatmul.mubr.msk.f32.vlgmr.msra.gmra.mrb[14].mxu1 %vm2542_vm6, %v2725_v35 }
 0x349   :  { %4665 = vmatpush3.bf16.msra.mxu1 %v4664_v32  ;;  %4372 = vmatprep.mubr.msk.f32.mxu1 %vm4899_vm5, %v4900_v40 }
 0x34a   :  { %4666 = vmatprep.subr.bf16.mxu1 %v4898_v31 }
 0x34d   :  { %4668 = vmatpush3.bf16.msra.mxu1 %v4667_v36 }
 0x34e   :  { %4669 = vmatprep.subr.bf16.mxu1 %v4898_v31 }
 0x351   :  { %4671 = vmatpush3.bf16.msra.mxu1 %v4670_v41 }
 0x352   :  { %4672 = vmatprep.subr.bf16.mxu1 %v4898_v31 }
 0x355   :  { %4674 = vmatpush3.bf16.msra.mxu1 %v4673_v44 }
 0x356   :  { %4675 = vmatprep.subr.bf16.mxu1 %v4898_v31 }
 0x359   :  { %4677 = vmatpush3.bf16.msra.mxu1 %v4676_v47  ;;  %v3088_v47 = vld [vmem:[%s6126_s9 + $0x10] sm:$0xff] }
 0x35a   :  { %4678 = vmatprep.subr.bf16.mxu1 %v4898_v31  ;;  %v4721_v48 = vpack.c.bf16 %v3089_v37, %v3088_v47 }
 0x35c   :  { %4373 = vmatmul.mubr.msk.f32.vlgmr.msra.gmra.mrb[16].mxu1 %vm2542_vm6, %v2811_v52  ;;  %v3092_v52 = vld [vmem:[%s6126_s9 + $0x30] sm:$0xff] }
 0x35d   :  { %4680 = vmatpush3.bf16.msra.mxu1 %v4679_v49  ;;  %4395 = vmatprep.mubr.msk.f32.mxu1 %vm4899_vm5, %v4900_v40  ;;  %v3090_v49 = vld [vmem:[%s6126_s9 + $0x20] sm:$0xff] }
 0x35e   :  { %4681 = vmatprep.subr.bf16.mxu1 %v4898_v31  ;;  %v4724_v51 = vpack.c.bf16 %v3091_v50, %v3090_v49 }
 0x361   :  { %4683 = vmatpush3.bf16.msra.mxu1 %v4682_v54 }
 0x362   :  { %4684 = vmatprep.subr.bf16.mxu1 %v4898_v31 }
 0x365   :  { %4686 = vmatpush3.bf16.msra.mxu1 %v4685_v57  ;;  %v4730_v57 = vpack.c.bf16 %v3095_v56, %v3094_v55 }
 0x366   :  { %4687 = vmatprep.subr.bf16.mxu1 %v4898_v31 }
 0x369   :  { %4689 = vmatpush3.bf16.msra.mxu1 %v4688_v45  ;;  %v4733_v45 = vpack.c.bf16 %v3097_v59, %v3096_v58 }
 0x36a   :  { %4690 = vmatprep.subr.bf16.mxu1 %v4898_v31 }
 0x36d   :  { %4692 = vmatpush3.bf16.msra.mxu1 %v4691_v63  ;;  %v4736_v63 = vpack.c.bf16 %v3099_v62, %v3098_v60 }
 0x36e   :  { %4693 = vmatprep.subr.bf16.mxu1 %v4898_v31 }
 0x370   :  { %4396 = vmatmul.mubr.msk.f32.vlgmr.msra.gmra.mrb[18].mxu1 %vm2542_vm6, %v2897_v0  ;;  %v3100_v0 = vld [vmem:[%s6126_s9 + $0x70] sm:$0xff] }
 0x371   :  { %4430 = vmatprep.mubr.msk.f32.mxu1 %vm4899_vm5, %v4900_v40  ;;  %4695 = vmatpush3.bf16.msra.mxu1 %v4694_v3  ;;  %v4739_v2 = vpack.c.bf16 %v3101_v1, %v3100_v0  ;;  %v3492_v3 = vld [vmem:[%s6127_s8] ss:$0 sm:$0xff] }
 0x372   :  { %4696 = vmatprep.subr.bf16.mxu1 %v4898_v31 }
 0x375   :  { %4698 = vmatpush3.bf16.msra.mxu1 %v4697_v7 }
 0x376   :  { %4699 = vmatprep.subr.bf16.mxu1 %v4898_v31 }
 0x379   :  { %4701 = vmatpush3.bf16.msra.mxu1 %v4700_v12 }
 0x37a   :  { %4702 = vmatprep.subr.bf16.mxu1 %v4898_v31 }
 0x37d   :  { %4704 = vmatpush3.bf16.msra.mxu1 %v4703_v14 }
 0x37e   :  { %4705 = vmatprep.subr.bf16.mxu1 %v4898_v31 }
 0x381   :  { %4707 = vmatpush3.bf16.msra.mxu1 %v4706_v16 }
 0x382   :  { %4708 = vmatprep.subr.bf16.mxu1 %v4898_v31 }
 0x385   :  { %4710 = vmatpush3.bf16.msra.mxu1 %v4709_v21 }
 0x386   :  { %4711 = vmatprep.subr.bf16.mxu1 %v4898_v31 }
 0x389   :  { %4713 = vmatpush3.bf16.msra.mxu1 %v4712_v24 }
 0x38a   :  { %4714 = vmatprep.subr.bf16.mxu1 %v4898_v31 }
 0x38d   :  { %4716 = vmatpush3.bf16.msra.mxu1 %v4715_v28 }
 0x38e   :  { %4717 = vmatprep.subr.bf16.mxu1 %v4898_v31 }
 0x3f3   :  { %v2648_v29 = vpop.f32.mrb[10].mxu1 }
 0x3f4   :  { %v4305_v61 = vpop.f32.mrb[11].mxu1 }
 0x407   :  { %v2721_v5 = vpop.f32.mrb[12].mxu1 }
 0x408   :  { %v2722_v11 = vadd.f32 %v2721_v5, %v2648_v29  ;;  %v4328_v19 = vpop.f32.mrb[13].mxu1 }
 0x41b   :  { %v2806_v25 = vpop.f32.mrb[14].mxu1 }
 0x41c   :  { %v2810_v30 = vadd.f32 %v2806_v25, %v2722_v11  ;;  %v4351_v32 = vpop.f32.mrb[15].mxu1 }
 0x42f   :  { %v2892_v33 = vpop.f32.mrb[16].mxu1 }
 0x430   :  { %v2896_v34 = vadd.f32 %v2892_v33, %v2810_v30  ;;  %v4374_v35 = vpop.f32.mrb[17].mxu1 }
 0x443   :  { %v2978_v36 = vpop.f32.mrb[18].mxu1 }
 0x444   :  { %v2982_v39 = vadd.f32 %v2978_v36, %v2896_v34  ;;  %v4397_v41 = vpop.f32.mrb[19].mxu1 }
 0x446   :  { %v2990_v44 = vadd.f32 %v3491_v38, %v2982_v39 }
 0x448   :  { %v2991_v46 = vmax.f32 %v2990_v44, 0.0 }
 0x44a   :  { %4431 = vmatmul.mubr.f32.vlgmr.msra.gmra.mrb[20].mxu1 %v2991_v46 }
 0x44b   :  { %4719 = vmatpush3.bf16.msra.mxu1 %v4718_v20  ;;  %4465 = vmatprep.mubr.msk.f32.mxu1 %vm4899_vm5, %v4900_v40  ;;  %v3093_v40 = vld [vmem:[%s6126_s9 + $0x38] sm:$0xff] }
 0x44c   :  { %4720 = vmatprep.subr.bf16.mxu1 %v4898_v31  ;;  %v4727_v54 = vpack.c.bf16 %v3093_v40, %v3092_v52 }
 0x44f   :  { %4722 = vmatpush3.bf16.msra.mxu1 %v4721_v48 }
 0x450   :  { %4723 = vmatprep.subr.bf16.mxu1 %v4898_v31 }
 0x453   :  { %4725 = vmatpush3.bf16.msra.mxu1 %v4724_v51 }
 0x454   :  { %4726 = vmatprep.subr.bf16.mxu1 %v4898_v31 }
 0x457   :  { %4728 = vmatpush3.bf16.msra.mxu1 %v4727_v54 }
 0x458   :  { %4729 = vmatprep.subr.bf16.mxu1 %v4898_v31 }
 0x45b   :  { %4731 = vmatpush3.bf16.msra.mxu1 %v4730_v57 }
 0x45c   :  { %4732 = vmatprep.subr.bf16.mxu1 %v4898_v31 }
 0x45f   :  { %4734 = vmatpush3.bf16.msra.mxu1 %v4733_v45 }
 0x460   :  { %4735 = vmatprep.subr.bf16.mxu1 %v4898_v31 }
 0x463   :  { %4737 = vmatpush3.bf16.msra.mxu1 %v4736_v63 }
 0x464   :  { %4738 = vmatprep.subr.bf16.mxu1 %v4898_v31  ;;  %v3493_v31 = vld [vmem:[%s6128_s10] ss:$0 sm:$0xff] }
 0x467   :  { %4740 = vmatpush3.bf16.msra.mxu1 %v4739_v2 }
 0x51d   :  { %v3081_v4 = vpop.f32.mrb[20].mxu1 }
 0x51e   :  { %v3082_v6 = vadd.f32 %v3492_v3, %v3081_v4  ;;  %v4432_v7 = vpop.f32.mrb[21].mxu1 }
 0x520   :  { %v3085_v8 = vmax.f32 %v3082_v6, 0.0 }
 0x522   :  { %4466 = vmatmul.mubr.f32.vlgmr.msra.gmra.mrb[22].mxu1 %v3085_v8 }
 0x5f5   :  { %v3175_v9 = vpop.f32.mrb[22].mxu1 }
 0x5f6   :  { %v3176_v10 = vadd.f32 %v3493_v31, %v3175_v9  ;;  %v4467_v12 = vpop.f32.mrb[23].mxu1 }
 0x5f8   :  { %3179 = vst [vmem:[%s6129_s11] sm:$0xff] %v3176_v10 }

</bundles_post_ra>
